<compile_context>
chip_gen: v7x
topology: tpu7x:2x2x1
jax: 0.10.0
libtpu: 0.0.40
codegen_flags: <defaults>
</compile_context>

<pallas_src>
import math

import numpy as np
import jax
import jax.numpy as jnp
from jax.experimental import pallas as pl
from jax.experimental.pallas import tpu as pltpu


# ---------------------------------------------------------------------------
# Host-side precomputation (NumPy, float64)
# ---------------------------------------------------------------------------

def _cconvm(N, s):
    M = np.zeros((N, N))
    dum = np.array(s, dtype=np.float64)
    for i in range(N):
        M[:, i] = dum
        dum = np.roll(dum, 1)
    return M


def _dis_s(N, app_ord=2):
    app_ord = int(app_ord / 2)
    s = np.concatenate([np.array([0.0, 1.0]),
                        np.zeros(N - 1 - 2 * app_ord),
                        np.array([1.0])])
    S = _cconvm(N, s) + np.diag(np.fft.fft(s).real)

    p = N
    r = math.floor(N / 2)
    P = np.zeros((p, p))
    P[0, 0] = 1.0
    even = 1 - p % 2
    for i in range(1, r - even + 1):
        P[i, i] = 1.0 / 2 ** 0.5
        P[i, p - i] = 1.0 / 2 ** 0.5
    if even:
        P[r, r] = 1.0
    for i in range(r + 1, p):
        P[i, i] = -1.0 / 2 ** 0.5
        P[i, p - i] = 1.0 / 2 ** 0.5

    CS = np.einsum('ij,jk,ni->nk', S, P.T, P)
    C2 = CS[0:math.floor(N / 2 + 1), 0:math.floor(N / 2 + 1)]
    S2 = CS[math.floor(N / 2 + 1):N, math.floor(N / 2 + 1):N]

    ec, vc = np.linalg.eig(C2)
    es, vs = np.linalg.eig(S2)
    ec, vc = ec.real, vc.real
    es, vs = es.real, vs.real

    qvc = np.vstack([vc, np.zeros((math.ceil(N / 2 - 1), math.floor(N / 2 + 1)))])
    SC2 = P @ qvc
    qvs = np.vstack([np.zeros((math.floor(N / 2 + 1), math.ceil(N / 2 - 1))), vs])
    SS2 = P @ qvs

    SC2 = SC2[:, np.argsort(-ec)]
    SS2 = SS2[:, np.argsort(-es)]

    if N % 2 == 0:
        S2C2 = np.zeros((N, N + 1))
        SS2 = np.hstack([SS2, np.zeros((SS2.shape[0], 1))])
        S2C2[:, np.arange(0, N + 1, 2)] = SC2
        S2C2[:, np.arange(1, N, 2)] = SS2
        S2C2 = S2C2[:, np.arange(S2C2.shape[1]) != N - 1]
    else:
        S2C2 = np.zeros((N, N))
        S2C2[:, np.arange(0, N + 1, 2)] = SC2
        S2C2[:, np.arange(1, N, 2)] = SS2
    return S2C2


def _dfrtmtrx(N, a):
    """Discrete fractional Fourier transform matrix (complex, N x N)."""
    Evec = _dis_s(N, 2)
    even = 1 - N % 2
    l = np.array(list(range(0, N - 1)) + [N - 1 + even], dtype=np.float64)
    f = np.diag(np.exp(-1j * math.pi / 2.0 * a * l))
    return N ** 0.5 * np.einsum('ij,jk,ni->nk', f, Evec.T, Evec)


def _conv3x3_stacked(w, H):
    """w: (Cout, Cin, 3, 3).  Returns the vstack [A_{-1}; A_0; A_{+1}] of shape
    (3*Cout*H, Cin*H) such that the padding=1 3x3 conv equals
        A_{-1} X T_{-1} + A_0 X + A_{+1} X T_{+1}
    on the stacked X = x.reshape(Cin*H, W), with T = colshift matrices."""
    Cout, Cin = w.shape[0], w.shape[1]
    blocks = []
    for dx in (-1, 0, 1):
        A = np.zeros((Cout * H, Cin * H))
        for o in range(Cout):
            for i in range(Cin):
                blk = np.zeros((H, H))
                for ky in range(3):
                    blk += w[o, i, ky, dx + 1] * np.eye(H, k=ky - 1)
                A[o * H:(o + 1) * H, i * H:(i + 1) * H] = blk
        blocks.append(A)
    return np.concatenate(blocks, axis=0)


def _fold_spectral_branch(aH, bH, c, d, Wmix, bias_vec, eH, fH, g, h, nC, H):
    """Fold, on the stacked (nC*H, .) layout:
         u + i v   = kron(I, aH + i bH) @ X          (left)
         re + i im = (u + i v) @ (c + i d)           (right)
         [r1; i1]  = kron(Wmix, I_H) @ [re; im] + bias
         p + i q   = kron(I, eH + i fH) @ (r1 + i i1)
       into   p = P1 X c + P2 X d + Pb ,   q = Q1 X c + Q2 X d + Qb.
       Returns vstack([P1;P2;Q1;Q2]), (Pb, Qb), and (c@g, d@g, c@h, d@h) so the caller
       can apply the final right multiply by (g + i h)."""
    nCH = nC * H
    Ic = np.eye(nC)
    a = np.kron(Ic, aH)
    b = np.kron(Ic, bH)
    e = np.kron(Ic, eH)
    f = np.kron(Ic, fH)
    K = np.kron(Wmix, np.eye(H))
    A, B = K[:nCH, :nCH], K[:nCH, nCH:]
    Cm, Dm = K[nCH:, :nCH], K[nCH:, nCH:]

    AaBb = A @ a + B @ b
    BaAb = B @ a - A @ b
    CaDb = Cm @ a + Dm @ b
    DaCb = Dm @ a - Cm @ b

    P1 = e @ AaBb - f @ CaDb
    P2 = e @ BaAb - f @ DaCb
    Q1 = f @ AaBb + e @ CaDb
    Q2 = f @ BaAb + e @ DaCb

    ncols = c.shape[1]
    Br = np.repeat(bias_vec[:nC], H)[:, None] * np.ones((1, ncols))
    Bi = np.repeat(bias_vec[nC:], H)[:, None] * np.ones((1, ncols))
    Pb = e @ Br - f @ Bi
    Qb = f @ Br + e @ Bi

    rights = (c @ g, d @ g, c @ h, d @ h)
    lefts = np.concatenate([P1, P2, Q1, Q2], axis=0)
    return lefts, (Pb, Qb), rights


def make_params(key, C):
    """Conv weights with PyTorch Conv2d default init (uniform +-1/sqrt(fan_in))."""
    C0 = int(C / 3)
    C1 = C - 2 * C0

    def conv_init(k, cout, cin, ksize):
        kw, kb = jax.random.split(k)
        fan_in = cin * ksize * ksize
        bound = 1.0 / np.sqrt(fan_in)
        shape = (cout, cin, ksize, ksize) if ksize > 1 else (cout, cin)
        w = jax.random.uniform(kw, shape, jnp.float32, -bound, bound)
        b = jax.random.uniform(kb, (cout,), jnp.float32, -bound, bound)
        return w, b

    k0, k05, k1, k2 = jax.random.split(key, 4)
    w0, b0 = conv_init(k0, C0, C0, 3)             # conv_0
    w05, b05 = conv_init(k05, 2 * C1, 2 * C1, 1)  # conv_05 (1x1)
    w1, b1 = conv_init(k1, 2 * C0, 2 * C0, 1)     # conv_1  (1x1)
    w2, b2 = conv_init(k2, C, C, 3)               # conv2
    return (w0, b0, w05, b05, w1, b1, w2, b2)


def make_kernel_consts(params, C, H, W, order):
    """Fold fftshifts, FFT/FRFT/irfft maps, 1x1 convs, biases, 1/(H*W), channel batching
    and 3x3-conv padding into dense f32 matrices consumed by the Pallas kernel."""
    C0 = int(C / 3)
    C1 = C - 2 * C0
    w0, b0, w05, b05, w1, b1, w2, b2 = [np.asarray(p, np.float64) for p in params]
    ones_w = np.ones((1, W))

    # --- fractional Fourier matrices with fftshift folded in ---
    F_h = _dfrtmtrx(H, order)
    F_w = _dfrtmtrx(W, order)
    Fi_h = _dfrtmtrx(H, -order)
    Fi_w = _dfrtmtrx(W, -order)
    S_H = np.roll(np.eye(H), H // 2, axis=0)
    T_W = np.roll(np.eye(W), W // 2, axis=1)
    HF = S_H @ F_h @ S_H
    WF = T_W @ F_w @ T_W
    HI = S_H @ Fi_h @ S_H
    WI = (T_W @ Fi_w @ T_W) / float(H * W)    # fold the final abs(.)/(H*W) scale

    l05, (Pb05, Qb05), r05 = _fold_spectral_branch(
        HF.real, HF.imag, WF.real, WF.imag, w05, b05,
        HI.real, HI.imag, WI.real, WI.imag, C1, H)
    bgr = Pb05 @ WI.real - Qb05 @ WI.imag      # constant bias of Re(IFRFT)
    bgi = Pb05 @ WI.imag + Qb05 @ WI.real      # constant bias of Im(IFRFT)

    # --- rfft2 -> 1x1 conv -> irfft2 branch (norm='backward', numpy semantics) ---
    Wf = W // 2 + 1
    Dh = np.fft.fft(np.eye(H), axis=0)         # fft along H  (left-multiply)
    Rw = np.fft.rfft(np.eye(W), axis=1)        # rfft along W (right-multiply), (W, Wf)
    Gh = np.fft.ifft(np.eye(H), axis=0)        # ifft along H (left-multiply)
    Mre = np.zeros((W, Wf))
    Mim = np.zeros((W, Wf))
    for k in range(Wf):
        e_k = np.zeros(Wf, dtype=np.complex128)
        e_k[k] = 1.0
        Mre[:, k] = np.fft.irfft(e_k, n=W)     # probe numpy's exact c2r behaviour
        Mim[:, k] = np.fft.irfft(1j * e_k, n=W)
    g1, h1 = Mre.T, Mim.T                      # (Wf, W)

    l1, (Pb1, Qb1), r1 = _fold_spectral_branch(
        Dh.real, Dh.imag, Rw.real, Rw.imag, w1, b1,
        Gh.real, Gh.imag, g1, h1, C0, H)
    by1 = Pb1 @ g1 + Qb1 @ h1                  # constant bias of y1, (C0*H, W)

    def f32(a):
        return jnp.asarray(a, dtype=jnp.float32)

    consts = (
        f32(_conv3x3_stacked(w0, H)),                        # a0  (3*C0H, C0H)
        f32(np.stack([np.eye(W, k=1), np.eye(W, k=-1)])),    # tw  (2, W, W): dx=-1, dx=+1
        f32(np.repeat(b0, H)[:, None] * ones_w),             # b0  (C0H, W)
        f32(l05),                                            # l05 (4*C1H, C1H)
        f32(np.stack(list(r05))),                            # r05 (4, W, W): cg,dg,ch,dh
        f32(np.stack([bgr, bgi])),                           # bg  (2, C1H, W)
        f32(l1),                                             # l1  (4*C0H, C0H)
        f32(np.stack(list(r1))),                             # r1  (4, W, W): cg,dg,ch,dh
        f32(by1),                                            # by1 (C0H, W)
        f32(_conv3x3_stacked(w2, H)),                        # a2  (3*CH, CH)
        f32(np.repeat(b2, H)[:, None] * ones_w),             # b2  (CH, W)
    )
    raw = dict(F_h=F_h, F_w=F_w, Fi_h=Fi_h, Fi_w=Fi_w)
    return consts, raw


# ---------------------------------------------------------------------------
# Pallas kernel: whole MFRFC forward for one batch element (stacked (C*H, W) layout)
# ---------------------------------------------------------------------------

def mfrfc_kernel(x_ref,
                 a0_ref, tw_ref, b0_ref,
                 l05_ref, r05_ref, bg_ref,
                 l1_ref, r1_ref, by1_ref,
                 a2_ref, b2_ref,
                 o_ref):
    f32 = jnp.float32

    def dot(a, b):
        return jnp.dot(a, b, preferred_element_type=f32)

    def conv3x3(a_ref, bias_ref, v):
        # padding=1 3x3 conv on the stacked layout:
        #   one matmul [A_-1; A_0; A_+1] @ v, then column shifts + sum + bias.
        rows = a_ref.shape[1]
        t = dot(a_ref[...], v)                           # (3*rows, W)
        acc = dot(t[:rows], tw_ref[0])                   # dx = -1
        acc = acc + t[rows:2 * rows]                     # dx =  0
        acc = acc + dot(t[2 * rows:], tw_ref[1])         # dx = +1
        return acc + bias_ref[...]

    xr = x_ref[0]                      # (C*H, W)
    c0h = b0_ref.shape[0]              # C0 * H
    c1h = bg_ref.shape[1]              # C1 * H

    x0 = xr[:c0h]
    x05 = xr[c0h:c0h + c1h]
    x1 = xr[c0h + c1h:]

    # ---- branch 0: Conv2d(C0, C0, 3, padding=1) ----
    y0 = conv3x3(a0_ref, b0_ref, x0)

    # ---- middle branch: FRFT2D -> 1x1 conv -> IFRFT2D -> |.|/(H*W), fully folded ----
    xl = dot(l05_ref[...], x05)                          # [P1;P2;Q1;Q2] @ x05
    p1x = xl[:c1h]
    p2x = xl[c1h:2 * c1h]
    q1x = xl[2 * c1h:3 * c1h]
    q2x = xl[3 * c1h:]
    gr = (dot(p1x, r05_ref[0]) + dot(p2x, r05_ref[1])
          - dot(q1x, r05_ref[2]) - dot(q2x, r05_ref[3]) + bg_ref[0])
    gi = (dot(p1x, r05_ref[2]) + dot(p2x, r05_ref[3])
          + dot(q1x, r05_ref[0]) + dot(q2x, r05_ref[1]) + bg_ref[1])
    y05 = jnp.sqrt(gr * gr + gi * gi)

    # ---- last branch: rfft2 -> 1x1 conv -> irfft2, fully folded (no W//2+1 dim) ----
    zl = dot(l1_ref[...], x1)                            # (4*C0H, W)
    z1 = zl[:c0h]
    z2 = zl[c0h:2 * c0h]
    z3 = zl[2 * c0h:3 * c0h]
    z4 = zl[3 * c0h:]
    y1 = (dot(z1, r1_ref[0]) + dot(z2, r1_ref[1])
          + dot(z3, r1_ref[2]) + dot(z4, r1_ref[3]) + by1_ref[...])

    # ---- concat channels + Conv2d(C, C, 3, padding=1) ----
    feat = jnp.concatenate([y0, y05, y1], axis=0)        # (C*H, W)
    out = conv3x3(a2_ref, b2_ref, feat)
    o_ref[0] = out.astype(o_ref.dtype)


def mfrfc_forward(x, consts):
    N, C, H, W = x.shape
    x_r = x.reshape(N, C * H, W).astype(jnp.float32)

    def const_spec(a):
        zeros = (0,) * a.ndim
        return pl.BlockSpec(a.shape, lambda n, z=zeros: z)

    out_r = pl.pallas_call(
        mfrfc_kernel,
        out_shape=jax.ShapeDtypeStruct((N, C * H, W), jnp.float32),
        grid=(N,),
        in_specs=[pl.BlockSpec((1, C * H, W), lambda n: (n, 0, 0))]
        + [const_spec(a) for a in consts],
        out_specs=pl.BlockSpec((1, C * H, W), lambda n: (n, 0, 0)),
        compiler_params=pltpu.CompilerParams(dimension_semantics=("parallel",)),
    )(x_r, *consts)
    return out_r.reshape(N, C, H, W)


# ---------------------------------------------------------------------------
# Independent float64 NumPy reference (literal port of the PyTorch forward)
# ---------------------------------------------------------------------------

def ref_forward(x, params, raw):
    x = np.asarray(x, np.float64)
    N, C, H, W = x.shape
    C0 = int(C / 3)
    C1 = C - 2 * C0
    w0, b0, w05, b05, w1, b1, w2, b2 = [np.asarray(p, np.float64) for p in params]

    def conv3x3(v, w, b):
        n, cin, h, ww = v.shape
        vp = np.pad(v, ((0, 0), (0, 0), (1, 1), (1, 1)))
        out = np.zeros((n, w.shape[0], h, ww))
        for ky in range(3):
            for kx in range(3):
                out += np.einsum('oc,nchw->nohw', w[:, :, ky, kx],
                                 vp[:, :, ky:ky + h, kx:kx + ww])
        return out + b.reshape(1, -1, 1, 1)

    def frft2d(v, Fh, Fw):
        vs = np.fft.fftshift(v, axes=(2, 3)).astype(np.complex128)
        out = np.einsum('hk,nckw->nchw', Fh, vs)
        out = np.einsum('nchw,wj->nchj', out, Fw)
        return np.fft.fftshift(out, axes=(2, 3))

    x0 = x[:, :C0]
    x05 = x[:, C0:C - C0]
    x1 = x[:, C - C0:]

    y0 = conv3x3(x0, w0, b0)

    Fre = frft2d(x05, raw['F_h'], raw['F_w'])
    Mix = np.concatenate([Fre.real, Fre.imag], axis=1)
    Mix = np.einsum('oc,nchw->nohw', w05, Mix) + b05.reshape(1, -1, 1, 1)
    Z = Mix[:, :C1] + 1j * Mix[:, C1:]
    G = frft2d(Z, raw['Fi_h'], raw['Fi_w'])
    y05 = np.abs(G) / (H * W)

    fre = np.fft.rfft2(x1, axes=(2, 3))
    mix = np.concatenate([fre.real, fre.imag], axis=1)
    mix = np.einsum('oc,nchw->nohw', w1, mix) + b1.reshape(1, -1, 1, 1)
    z1 = mix[:, :C0] + 1j * mix[:, C0:]
    y1 = np.fft.irfft2(z1, s=(H, W), axes=(2, 3))

    feat = np.concatenate([y0, y05, y1], axis=1)
    return conv3x3(feat, w2, b2)


# ---------------------------------------------------------------------------

if __name__ == "__main__":
    key = jax.random.PRNGKey(0)
    N, C, H, W = 2, 6, 16, 16      # C0 = C1 = 2
    order = 0.25

    key, kx, kp = jax.random.split(key, 3)
    x = jax.random.normal(kx, (N, C, H, W), jnp.float32)
    params = make_params(kp, C)

    consts, raw = make_kernel_consts(params, C, H, W, order)

    out = mfrfc_forward(x, consts)
    out = jax.block_until_ready(out)

    ref = ref_forward(np.asarray(x), params, raw)
    assert out.shape == ref.shape, (out.shape, ref.shape)
    np.testing.assert_allclose(np.asarray(out, np.float64), ref, rtol=3e-3, atol=3e-3)

    print("KERNEL_OK")
</pallas_src>

<mosaic_0001>
module attributes {stable_mosaic.version = 11 : i64} {
  func.func @mfrfc_kernel(%arg0: i32, %arg1: memref<1x96x16xf32, #tpu.memory_space<vmem>>, %arg2: memref<96x32xf32, #tpu.memory_space<vmem>>, %arg3: memref<2x16x16xf32, #tpu.memory_space<vmem>>, %arg4: memref<32x16xf32, #tpu.memory_space<vmem>>, %arg5: memref<128x32xf32, #tpu.memory_space<vmem>>, %arg6: memref<4x16x16xf32, #tpu.memory_space<vmem>>, %arg7: memref<2x32x16xf32, #tpu.memory_space<vmem>>, %arg8: memref<128x32xf32, #tpu.memory_space<vmem>>, %arg9: memref<4x16x16xf32, #tpu.memory_space<vmem>>, %arg10: memref<32x16xf32, #tpu.memory_space<vmem>>, %arg11: memref<288x96xf32, #tpu.memory_space<vmem>>, %arg12: memref<96x16xf32, #tpu.memory_space<vmem>>, %arg13: memref<1x96x16xf32, #tpu.memory_space<vmem>>) attributes {dimension_semantics = [#tpu.dimension_semantics<parallel>], iteration_bounds = array<i64: 2>, scalar_prefetch = 0 : i64, scratch_operands = 0 : i64, tpu.core_type = #tpu.core_type<tc>, window_params = [{transform_indices = @transform_0, window_bounds = array<i64: 1, 96, 16>}, {pipeline_mode = #tpu.pipeline_mode<synchronous>, transform_indices = @transform_1, window_bounds = array<i64: 96, 32>}, {pipeline_mode = #tpu.pipeline_mode<synchronous>, transform_indices = @transform_2, window_bounds = array<i64: 2, 16, 16>}, {pipeline_mode = #tpu.pipeline_mode<synchronous>, transform_indices = @transform_3, window_bounds = array<i64: 32, 16>}, {pipeline_mode = #tpu.pipeline_mode<synchronous>, transform_indices = @transform_4, window_bounds = array<i64: 128, 32>}, {pipeline_mode = #tpu.pipeline_mode<synchronous>, transform_indices = @transform_5, window_bounds = array<i64: 4, 16, 16>}, {pipeline_mode = #tpu.pipeline_mode<synchronous>, transform_indices = @transform_6, window_bounds = array<i64: 2, 32, 16>}, {pipeline_mode = #tpu.pipeline_mode<synchronous>, transform_indices = @transform_7, window_bounds = array<i64: 128, 32>}, {pipeline_mode = #tpu.pipeline_mode<synchronous>, transform_indices = @transform_8, window_bounds = array<i64: 4, 16, 16>}, {pipeline_mode = #tpu.pipeline_mode<synchronous>, transform_indices = @transform_9, window_bounds = array<i64: 32, 16>}, {pipeline_mode = #tpu.pipeline_mode<synchronous>, transform_indices = @transform_10, window_bounds = array<i64: 288, 96>}, {pipeline_mode = #tpu.pipeline_mode<synchronous>, transform_indices = @transform_11, window_bounds = array<i64: 96, 16>}, {transform_indices = @transform_12, window_bounds = array<i64: 1, 96, 16>}]} {
    %c0 = arith.constant 0 : index
    %c0_0 = arith.constant 0 : index
    %c0_1 = arith.constant 0 : index
    %0 = vector.load %arg1[%c0, %c0_0, %c0_1] : memref<1x96x16xf32, #tpu.memory_space<vmem>>, vector<1x96x16xf32>
    %1 = vector.shape_cast %0 : vector<1x96x16xf32> to vector<96x16xf32>
    %2 = vector.extract_strided_slice %1 {offsets = [0, 0], sizes = [32, 16], strides = [1, 1]} : vector<96x16xf32> to vector<32x16xf32>
    %3 = vector.extract_strided_slice %1 {offsets = [32, 0], sizes = [32, 16], strides = [1, 1]} : vector<96x16xf32> to vector<32x16xf32>
    %4 = vector.extract_strided_slice %1 {offsets = [64, 0], sizes = [32, 16], strides = [1, 1]} : vector<96x16xf32> to vector<32x16xf32>
    %c0_2 = arith.constant 0 : index
    %c0_3 = arith.constant 0 : index
    %5 = vector.load %arg2[%c0_2, %c0_3] : memref<96x32xf32, #tpu.memory_space<vmem>>, vector<96x32xf32>
    %cst = arith.constant dense<0.000000e+00> : vector<96x16xf32>
    %6 = tpu.matmul %5, %2, %cst {dimension_numbers = #tpu.dot_dimension_numbers<[1], [0], [0], [1], [0, 0, 1, 1], [], []>} : vector<96x32xf32>, vector<32x16xf32>, vector<96x16xf32> -> vector<96x16xf32>
    %7 = vector.extract_strided_slice %6 {offsets = [0, 0], sizes = [32, 16], strides = [1, 1]} : vector<96x16xf32> to vector<32x16xf32>
    %c0_4 = arith.constant 0 : index
    %c0_5 = arith.constant 0 : index
    %c0_6 = arith.constant 0 : index
    %8 = vector.load %arg3[%c0_4, %c0_5, %c0_6] : memref<2x16x16xf32, #tpu.memory_space<vmem>>, vector<1x16x16xf32>
    %9 = vector.shape_cast %8 : vector<1x16x16xf32> to vector<16x16xf32>
    %cst_7 = arith.constant dense<0.000000e+00> : vector<32x16xf32>
    %10 = tpu.matmul %7, %9, %cst_7 {dimension_numbers = #tpu.dot_dimension_numbers<[1], [0], [0], [1], [0, 0, 1, 1], [], []>} : vector<32x16xf32>, vector<16x16xf32>, vector<32x16xf32> -> vector<32x16xf32>
    %11 = vector.extract_strided_slice %6 {offsets = [32, 0], sizes = [32, 16], strides = [1, 1]} : vector<96x16xf32> to vector<32x16xf32>
    %12 = arith.addf %10, %11 : vector<32x16xf32>
    %13 = vector.extract_strided_slice %6 {offsets = [64, 0], sizes = [32, 16], strides = [1, 1]} : vector<96x16xf32> to vector<32x16xf32>
    %c1 = arith.constant 1 : index
    %c0_8 = arith.constant 0 : index
    %c0_9 = arith.constant 0 : index
    %14 = vector.load %arg3[%c1, %c0_8, %c0_9] : memref<2x16x16xf32, #tpu.memory_space<vmem>>, vector<1x16x16xf32>
    %15 = vector.shape_cast %14 : vector<1x16x16xf32> to vector<16x16xf32>
    %cst_10 = arith.constant dense<0.000000e+00> : vector<32x16xf32>
    %16 = tpu.matmul %13, %15, %cst_10 {dimension_numbers = #tpu.dot_dimension_numbers<[1], [0], [0], [1], [0, 0, 1, 1], [], []>} : vector<32x16xf32>, vector<16x16xf32>, vector<32x16xf32> -> vector<32x16xf32>
    %17 = arith.addf %12, %16 : vector<32x16xf32>
    %c0_11 = arith.constant 0 : index
    %c0_12 = arith.constant 0 : index
    %18 = vector.load %arg4[%c0_11, %c0_12] : memref<32x16xf32, #tpu.memory_space<vmem>>, vector<32x16xf32>
    %19 = arith.addf %17, %18 : vector<32x16xf32>
    %c0_13 = arith.constant 0 : index
    %c0_14 = arith.constant 0 : index
    %20 = vector.load %arg5[%c0_13, %c0_14] : memref<128x32xf32, #tpu.memory_space<vmem>>, vector<128x32xf32>
    %cst_15 = arith.constant dense<0.000000e+00> : vector<128x16xf32>
    %21 = tpu.matmul %20, %3, %cst_15 {dimension_numbers = #tpu.dot_dimension_numbers<[1], [0], [0], [1], [0, 0, 1, 1], [], []>} : vector<128x32xf32>, vector<32x16xf32>, vector<128x16xf32> -> vector<128x16xf32>
    %22 = vector.extract_strided_slice %21 {offsets = [0, 0], sizes = [32, 16], strides = [1, 1]} : vector<128x16xf32> to vector<32x16xf32>
    %23 = vector.extract_strided_slice %21 {offsets = [32, 0], sizes = [32, 16], strides = [1, 1]} : vector<128x16xf32> to vector<32x16xf32>
    %24 = vector.extract_strided_slice %21 {offsets = [64, 0], sizes = [32, 16], strides = [1, 1]} : vector<128x16xf32> to vector<32x16xf32>
    %25 = vector.extract_strided_slice %21 {offsets = [96, 0], sizes = [32, 16], strides = [1, 1]} : vector<128x16xf32> to vector<32x16xf32>
    %c0_16 = arith.constant 0 : index
    %c0_17 = arith.constant 0 : index
    %c0_18 = arith.constant 0 : index
    %26 = vector.load %arg6[%c0_16, %c0_17, %c0_18] : memref<4x16x16xf32, #tpu.memory_space<vmem>>, vector<1x16x16xf32>
    %27 = vector.shape_cast %26 : vector<1x16x16xf32> to vector<16x16xf32>
    %cst_19 = arith.constant dense<0.000000e+00> : vector<32x16xf32>
    %28 = tpu.matmul %22, %27, %cst_19 {dimension_numbers = #tpu.dot_dimension_numbers<[1], [0], [0], [1], [0, 0, 1, 1], [], []>} : vector<32x16xf32>, vector<16x16xf32>, vector<32x16xf32> -> vector<32x16xf32>
    %c1_20 = arith.constant 1 : index
    %c0_21 = arith.constant 0 : index
    %c0_22 = arith.constant 0 : index
    %29 = vector.load %arg6[%c1_20, %c0_21, %c0_22] : memref<4x16x16xf32, #tpu.memory_space<vmem>>, vector<1x16x16xf32>
    %30 = vector.shape_cast %29 : vector<1x16x16xf32> to vector<16x16xf32>
    %cst_23 = arith.constant dense<0.000000e+00> : vector<32x16xf32>
    %31 = tpu.matmul %23, %30, %cst_23 {dimension_numbers = #tpu.dot_dimension_numbers<[1], [0], [0], [1], [0, 0, 1, 1], [], []>} : vector<32x16xf32>, vector<16x16xf32>, vector<32x16xf32> -> vector<32x16xf32>
    %32 = arith.addf %28, %31 : vector<32x16xf32>
    %c2 = arith.constant 2 : index
    %c0_24 = arith.constant 0 : index
    %c0_25 = arith.constant 0 : index
    %33 = vector.load %arg6[%c2, %c0_24, %c0_25] : memref<4x16x16xf32, #tpu.memory_space<vmem>>, vector<1x16x16xf32>
    %34 = vector.shape_cast %33 : vector<1x16x16xf32> to vector<16x16xf32>
    %cst_26 = arith.constant dense<0.000000e+00> : vector<32x16xf32>
    %35 = tpu.matmul %24, %34, %cst_26 {dimension_numbers = #tpu.dot_dimension_numbers<[1], [0], [0], [1], [0, 0, 1, 1], [], []>} : vector<32x16xf32>, vector<16x16xf32>, vector<32x16xf32> -> vector<32x16xf32>
    %36 = arith.subf %32, %35 : vector<32x16xf32>
    %c3 = arith.constant 3 : index
    %c0_27 = arith.constant 0 : index
    %c0_28 = arith.constant 0 : index
    %37 = vector.load %arg6[%c3, %c0_27, %c0_28] : memref<4x16x16xf32, #tpu.memory_space<vmem>>, vector<1x16x16xf32>
    %38 = vector.shape_cast %37 : vector<1x16x16xf32> to vector<16x16xf32>
    %cst_29 = arith.constant dense<0.000000e+00> : vector<32x16xf32>
    %39 = tpu.matmul %25, %38, %cst_29 {dimension_numbers = #tpu.dot_dimension_numbers<[1], [0], [0], [1], [0, 0, 1, 1], [], []>} : vector<32x16xf32>, vector<16x16xf32>, vector<32x16xf32> -> vector<32x16xf32>
    %40 = arith.subf %36, %39 : vector<32x16xf32>
    %c0_30 = arith.constant 0 : index
    %c0_31 = arith.constant 0 : index
    %c0_32 = arith.constant 0 : index
    %41 = vector.load %arg7[%c0_30, %c0_31, %c0_32] : memref<2x32x16xf32, #tpu.memory_space<vmem>>, vector<1x32x16xf32>
    %42 = vector.shape_cast %41 : vector<1x32x16xf32> to vector<32x16xf32>
    %43 = arith.addf %40, %42 : vector<32x16xf32>
    %c2_33 = arith.constant 2 : index
    %c0_34 = arith.constant 0 : index
    %c0_35 = arith.constant 0 : index
    %44 = vector.load %arg6[%c2_33, %c0_34, %c0_35] : memref<4x16x16xf32, #tpu.memory_space<vmem>>, vector<1x16x16xf32>
    %45 = vector.shape_cast %44 : vector<1x16x16xf32> to vector<16x16xf32>
    %cst_36 = arith.constant dense<0.000000e+00> : vector<32x16xf32>
    %46 = tpu.matmul %22, %45, %cst_36 {dimension_numbers = #tpu.dot_dimension_numbers<[1], [0], [0], [1], [0, 0, 1, 1], [], []>} : vector<32x16xf32>, vector<16x16xf32>, vector<32x16xf32> -> vector<32x16xf32>
    %c3_37 = arith.constant 3 : index
    %c0_38 = arith.constant 0 : index
    %c0_39 = arith.constant 0 : index
    %47 = vector.load %arg6[%c3_37, %c0_38, %c0_39] : memref<4x16x16xf32, #tpu.memory_space<vmem>>, vector<1x16x16xf32>
    %48 = vector.shape_cast %47 : vector<1x16x16xf32> to vector<16x16xf32>
    %cst_40 = arith.constant dense<0.000000e+00> : vector<32x16xf32>
    %49 = tpu.matmul %23, %48, %cst_40 {dimension_numbers = #tpu.dot_dimension_numbers<[1], [0], [0], [1], [0, 0, 1, 1], [], []>} : vector<32x16xf32>, vector<16x16xf32>, vector<32x16xf32> -> vector<32x16xf32>
    %50 = arith.addf %46, %49 : vector<32x16xf32>
    %c0_41 = arith.constant 0 : index
    %c0_42 = arith.constant 0 : index
    %c0_43 = arith.constant 0 : index
    %51 = vector.load %arg6[%c0_41, %c0_42, %c0_43] : memref<4x16x16xf32, #tpu.memory_space<vmem>>, vector<1x16x16xf32>
    %52 = vector.shape_cast %51 : vector<1x16x16xf32> to vector<16x16xf32>
    %cst_44 = arith.constant dense<0.000000e+00> : vector<32x16xf32>
    %53 = tpu.matmul %24, %52, %cst_44 {dimension_numbers = #tpu.dot_dimension_numbers<[1], [0], [0], [1], [0, 0, 1, 1], [], []>} : vector<32x16xf32>, vector<16x16xf32>, vector<32x16xf32> -> vector<32x16xf32>
    %54 = arith.addf %50, %53 : vector<32x16xf32>
    %c1_45 = arith.constant 1 : index
    %c0_46 = arith.constant 0 : index
    %c0_47 = arith.constant 0 : index
    %55 = vector.load %arg6[%c1_45, %c0_46, %c0_47] : memref<4x16x16xf32, #tpu.memory_space<vmem>>, vector<1x16x16xf32>
    %56 = vector.shape_cast %55 : vector<1x16x16xf32> to vector<16x16xf32>
    %cst_48 = arith.constant dense<0.000000e+00> : vector<32x16xf32>
    %57 = tpu.matmul %25, %56, %cst_48 {dimension_numbers = #tpu.dot_dimension_numbers<[1], [0], [0], [1], [0, 0, 1, 1], [], []>} : vector<32x16xf32>, vector<16x16xf32>, vector<32x16xf32> -> vector<32x16xf32>
    %58 = arith.addf %54, %57 : vector<32x16xf32>
    %c1_49 = arith.constant 1 : index
    %c0_50 = arith.constant 0 : index
    %c0_51 = arith.constant 0 : index
    %59 = vector.load %arg7[%c1_49, %c0_50, %c0_51] : memref<2x32x16xf32, #tpu.memory_space<vmem>>, vector<1x32x16xf32>
    %60 = vector.shape_cast %59 : vector<1x32x16xf32> to vector<32x16xf32>
    %61 = arith.addf %58, %60 : vector<32x16xf32>
    %62 = arith.mulf %43, %43 : vector<32x16xf32>
    %63 = arith.mulf %61, %61 : vector<32x16xf32>
    %64 = arith.addf %62, %63 : vector<32x16xf32>
    %65 = math.sqrt %64 : vector<32x16xf32>
    %c0_52 = arith.constant 0 : index
    %c0_53 = arith.constant 0 : index
    %66 = vector.load %arg8[%c0_52, %c0_53] : memref<128x32xf32, #tpu.memory_space<vmem>>, vector<128x32xf32>
    %cst_54 = arith.constant dense<0.000000e+00> : vector<128x16xf32>
    %67 = tpu.matmul %66, %4, %cst_54 {dimension_numbers = #tpu.dot_dimension_numbers<[1], [0], [0], [1], [0, 0, 1, 1], [], []>} : vector<128x32xf32>, vector<32x16xf32>, vector<128x16xf32> -> vector<128x16xf32>
    %68 = vector.extract_strided_slice %67 {offsets = [0, 0], sizes = [32, 16], strides = [1, 1]} : vector<128x16xf32> to vector<32x16xf32>
    %69 = vector.extract_strided_slice %67 {offsets = [32, 0], sizes = [32, 16], strides = [1, 1]} : vector<128x16xf32> to vector<32x16xf32>
    %70 = vector.extract_strided_slice %67 {offsets = [64, 0], sizes = [32, 16], strides = [1, 1]} : vector<128x16xf32> to vector<32x16xf32>
    %71 = vector.extract_strided_slice %67 {offsets = [96, 0], sizes = [32, 16], strides = [1, 1]} : vector<128x16xf32> to vector<32x16xf32>
    %c0_55 = arith.constant 0 : index
    %c0_56 = arith.constant 0 : index
    %c0_57 = arith.constant 0 : index
    %72 = vector.load %arg9[%c0_55, %c0_56, %c0_57] : memref<4x16x16xf32, #tpu.memory_space<vmem>>, vector<1x16x16xf32>
    %73 = vector.shape_cast %72 : vector<1x16x16xf32> to vector<16x16xf32>
    %cst_58 = arith.constant dense<0.000000e+00> : vector<32x16xf32>
    %74 = tpu.matmul %68, %73, %cst_58 {dimension_numbers = #tpu.dot_dimension_numbers<[1], [0], [0], [1], [0, 0, 1, 1], [], []>} : vector<32x16xf32>, vector<16x16xf32>, vector<32x16xf32> -> vector<32x16xf32>
    %c1_59 = arith.constant 1 : index
    %c0_60 = arith.constant 0 : index
    %c0_61 = arith.constant 0 : index
    %75 = vector.load %arg9[%c1_59, %c0_60, %c0_61] : memref<4x16x16xf32, #tpu.memory_space<vmem>>, vector<1x16x16xf32>
    %76 = vector.shape_cast %75 : vector<1x16x16xf32> to vector<16x16xf32>
    %cst_62 = arith.constant dense<0.000000e+00> : vector<32x16xf32>
    %77 = tpu.matmul %69, %76, %cst_62 {dimension_numbers = #tpu.dot_dimension_numbers<[1], [0], [0], [1], [0, 0, 1, 1], [], []>} : vector<32x16xf32>, vector<16x16xf32>, vector<32x16xf32> -> vector<32x16xf32>
    %78 = arith.addf %74, %77 : vector<32x16xf32>
    %c2_63 = arith.constant 2 : index
    %c0_64 = arith.constant 0 : index
    %c0_65 = arith.constant 0 : index
    %79 = vector.load %arg9[%c2_63, %c0_64, %c0_65] : memref<4x16x16xf32, #tpu.memory_space<vmem>>, vector<1x16x16xf32>
    %80 = vector.shape_cast %79 : vector<1x16x16xf32> to vector<16x16xf32>
    %cst_66 = arith.constant dense<0.000000e+00> : vector<32x16xf32>
    %81 = tpu.matmul %70, %80, %cst_66 {dimension_numbers = #tpu.dot_dimension_numbers<[1], [0], [0], [1], [0, 0, 1, 1], [], []>} : vector<32x16xf32>, vector<16x16xf32>, vector<32x16xf32> -> vector<32x16xf32>
    %82 = arith.addf %78, %81 : vector<32x16xf32>
    %c3_67 = arith.constant 3 : index
    %c0_68 = arith.constant 0 : index
    %c0_69 = arith.constant 0 : index
    %83 = vector.load %arg9[%c3_67, %c0_68, %c0_69] : memref<4x16x16xf32, #tpu.memory_space<vmem>>, vector<1x16x16xf32>
    %84 = vector.shape_cast %83 : vector<1x16x16xf32> to vector<16x16xf32>
    %cst_70 = arith.constant dense<0.000000e+00> : vector<32x16xf32>
    %85 = tpu.matmul %71, %84, %cst_70 {dimension_numbers = #tpu.dot_dimension_numbers<[1], [0], [0], [1], [0, 0, 1, 1], [], []>} : vector<32x16xf32>, vector<16x16xf32>, vector<32x16xf32> -> vector<32x16xf32>
    %86 = arith.addf %82, %85 : vector<32x16xf32>
    %c0_71 = arith.constant 0 : index
    %c0_72 = arith.constant 0 : index
    %87 = vector.load %arg10[%c0_71, %c0_72] : memref<32x16xf32, #tpu.memory_space<vmem>>, vector<32x16xf32>
    %88 = arith.addf %86, %87 : vector<32x16xf32>
    %89 = tpu.concatenate %19, %65, %88 in 0 : vector<32x16xf32>, vector<32x16xf32>, vector<32x16xf32> -> vector<96x16xf32>
    %c0_73 = arith.constant 0 : index
    %c0_74 = arith.constant 0 : index
    %90 = vector.load %arg11[%c0_73, %c0_74] : memref<288x96xf32, #tpu.memory_space<vmem>>, vector<288x96xf32>
    %cst_75 = arith.constant dense<0.000000e+00> : vector<288x16xf32>
    %91 = tpu.matmul %90, %89, %cst_75 {dimension_numbers = #tpu.dot_dimension_numbers<[1], [0], [0], [1], [0, 0, 1, 1], [], []>} : vector<288x96xf32>, vector<96x16xf32>, vector<288x16xf32> -> vector<288x16xf32>
    %92 = vector.extract_strided_slice %91 {offsets = [0, 0], sizes = [96, 16], strides = [1, 1]} : vector<288x16xf32> to vector<96x16xf32>
    %c0_76 = arith.constant 0 : index
    %c0_77 = arith.constant 0 : index
    %c0_78 = arith.constant 0 : index
    %93 = vector.load %arg3[%c0_76, %c0_77, %c0_78] : memref<2x16x16xf32, #tpu.memory_space<vmem>>, vector<1x16x16xf32>
    %94 = vector.shape_cast %93 : vector<1x16x16xf32> to vector<16x16xf32>
    %cst_79 = arith.constant dense<0.000000e+00> : vector<96x16xf32>
    %95 = tpu.matmul %92, %94, %cst_79 {dimension_numbers = #tpu.dot_dimension_numbers<[1], [0], [0], [1], [0, 0, 1, 1], [], []>} : vector<96x16xf32>, vector<16x16xf32>, vector<96x16xf32> -> vector<96x16xf32>
    %96 = vector.extract_strided_slice %91 {offsets = [96, 0], sizes = [96, 16], strides = [1, 1]} : vector<288x16xf32> to vector<96x16xf32>
    %97 = arith.addf %95, %96 : vector<96x16xf32>
    %98 = vector.extract_strided_slice %91 {offsets = [192, 0], sizes = [96, 16], strides = [1, 1]} : vector<288x16xf32> to vector<96x16xf32>
    %c1_80 = arith.constant 1 : index
    %c0_81 = arith.constant 0 : index
    %c0_82 = arith.constant 0 : index
    %99 = vector.load %arg3[%c1_80, %c0_81, %c0_82] : memref<2x16x16xf32, #tpu.memory_space<vmem>>, vector<1x16x16xf32>
    %100 = vector.shape_cast %99 : vector<1x16x16xf32> to vector<16x16xf32>
    %cst_83 = arith.constant dense<0.000000e+00> : vector<96x16xf32>
    %101 = tpu.matmul %98, %100, %cst_83 {dimension_numbers = #tpu.dot_dimension_numbers<[1], [0], [0], [1], [0, 0, 1, 1], [], []>} : vector<96x16xf32>, vector<16x16xf32>, vector<96x16xf32> -> vector<96x16xf32>
    %102 = arith.addf %97, %101 : vector<96x16xf32>
    %c0_84 = arith.constant 0 : index
    %c0_85 = arith.constant 0 : index
    %103 = vector.load %arg12[%c0_84, %c0_85] : memref<96x16xf32, #tpu.memory_space<vmem>>, vector<96x16xf32>
    %104 = arith.addf %102, %103 : vector<96x16xf32>
    %c0_86 = arith.constant 0 : index
    %c0_87 = arith.constant 0 : index
    %c0_88 = arith.constant 0 : index
    %105 = vector.load %arg13[%c0_86, %c0_87, %c0_88] : memref<1x96x16xf32, #tpu.memory_space<vmem>>, vector<1x96x16xf32>
    %106 = vector.shape_cast %105 : vector<1x96x16xf32> to vector<96x16xf32>
    %107 = vector.shape_cast %104 : vector<96x16xf32> to vector<1x96x16xf32>
    tpu.vector_store %arg13[%c0_86, %c0_87, %c0_88], %107 {strides = array<i32>} : memref<1x96x16xf32, #tpu.memory_space<vmem>>, vector<1x96x16xf32>,
    return
  }
  func.func @transform_0(%arg0: i32) -> (i32, i32, i32) {
    %c0_i32 = arith.constant 0 : i32
    %c0_i32_0 = arith.constant 0 : i32
    %c0_i32_1 = arith.constant 0 : i32
    return %arg0, %c0_i32, %c0_i32_0 : i32, i32, i32
  }
  func.func @transform_1(%arg0: i32) -> (i32, i32) {
    %c0_i32 = arith.constant 0 : i32
    %c0_i32_0 = arith.constant 0 : i32
    %c0_i32_1 = arith.constant 0 : i32
    return %c0_i32, %c0_i32_0 : i32, i32
  }
  func.func @transform_2(%arg0: i32) -> (i32, i32, i32) {
    %c0_i32 = arith.constant 0 : i32
    %c0_i32_0 = arith.constant 0 : i32
    %c0_i32_1 = arith.constant 0 : i32
    %c0_i32_2 = arith.constant 0 : i32
    return %c0_i32, %c0_i32_0, %c0_i32_1 : i32, i32, i32
  }
  func.func @transform_3(%arg0: i32) -> (i32, i32) {
    %c0_i32 = arith.constant 0 : i32
    %c0_i32_0 = arith.constant 0 : i32
    %c0_i32_1 = arith.constant 0 : i32
    return %c0_i32, %c0_i32_0 : i32, i32
  }
  func.func @transform_4(%arg0: i32) -> (i32, i32) {
    %c0_i32 = arith.constant 0 : i32
    %c0_i32_0 = arith.constant 0 : i32
    %c0_i32_1 = arith.constant 0 : i32
    return %c0_i32, %c0_i32_0 : i32, i32
  }
  func.func @transform_5(%arg0: i32) -> (i32, i32, i32) {
    %c0_i32 = arith.constant 0 : i32
    %c0_i32_0 = arith.constant 0 : i32
    %c0_i32_1 = arith.constant 0 : i32
    %c0_i32_2 = arith.constant 0 : i32
    return %c0_i32, %c0_i32_0, %c0_i32_1 : i32, i32, i32
  }
  func.func @transform_6(%arg0: i32) -> (i32, i32, i32) {
    %c0_i32 = arith.constant 0 : i32
    %c0_i32_0 = arith.constant 0 : i32
    %c0_i32_1 = arith.constant 0 : i32
    %c0_i32_2 = arith.constant 0 : i32
    return %c0_i32, %c0_i32_0, %c0_i32_1 : i32, i32, i32
  }
  func.func @transform_7(%arg0: i32) -> (i32, i32) {
    %c0_i32 = arith.constant 0 : i32
    %c0_i32_0 = arith.constant 0 : i32
    %c0_i32_1 = arith.constant 0 : i32
    return %c0_i32, %c0_i32_0 : i32, i32
  }
  func.func @transform_8(%arg0: i32) -> (i32, i32, i32) {
    %c0_i32 = arith.constant 0 : i32
    %c0_i32_0 = arith.constant 0 : i32
    %c0_i32_1 = arith.constant 0 : i32
    %c0_i32_2 = arith.constant 0 : i32
    return %c0_i32, %c0_i32_0, %c0_i32_1 : i32, i32, i32
  }
  func.func @transform_9(%arg0: i32) -> (i32, i32) {
    %c0_i32 = arith.constant 0 : i32
    %c0_i32_0 = arith.constant 0 : i32
    %c0_i32_1 = arith.constant 0 : i32
    return %c0_i32, %c0_i32_0 : i32, i32
  }
  func.func @transform_10(%arg0: i32) -> (i32, i32) {
    %c0_i32 = arith.constant 0 : i32
    %c0_i32_0 = arith.constant 0 : i32
    %c0_i32_1 = arith.constant 0 : i32
    return %c0_i32, %c0_i32_0 : i32, i32
  }
  func.func @transform_11(%arg0: i32) -> (i32, i32) {
    %c0_i32 = arith.constant 0 : i32
    %c0_i32_0 = arith.constant 0 : i32
    %c0_i32_1 = arith.constant 0 : i32
    return %c0_i32, %c0_i32_0 : i32, i32
  }
  func.func @transform_12(%arg0: i32) -> (i32, i32, i32) {
    %c0_i32 = arith.constant 0 : i32
    %c0_i32_0 = arith.constant 0 : i32
    %c0_i32_1 = arith.constant 0 : i32
    return %arg0, %c0_i32, %c0_i32_0 : i32, i32, i32
  }
}

</mosaic_0001>

<bundles_post_ra>
// kernel: tpu_custom_call.1
= control target key start
LH: loop header
LB: loop body
LE: loop exit
PB: predicated region body
PF: predicated region fallthrough
CT: control target
= control target key end

     0   :  { %s4301_s21 = smov 0   ;;  %s4988_s0 = inlined_call_operand.vmem [shape: f32[2,96,16], index: 0, kind: input, shape index: {}]   ;;  %s4989_s1 = inlined_call_operand.vmem [shape: f32[96,32], index: 1, kind: input, shape index: {}]   ;;  %s4990_s2 = inlined_call_operand.vmem [shape: f32[2,16,16], index: 2, kind: input, shape index: {}]   ;;  %s4991_s3 = inlined_call_operand.vmem [shape: f32[32,16], index: 3, kind: input, shape index: {}]   ;;  %s4992_s4 = inlined_call_operand.vmem [shape: f32[128,32], index: 4, kind: input, shape index: {}]   ;;  %s4993_s5 = inlined_call_operand.vmem [shape: f32[4,16,16], index: 5, kind: input, shape index: {}]   ;;  %s4994_s6 = inlined_call_operand.vmem [shape: f32[2,32,16], index: 6, kind: input, shape index: {}]   ;;  %s4995_s7 = inlined_call_operand.vmem [shape: f32[128,32], index: 7, kind: input, shape index: {}]   ;;  %s4996_s8 = inlined_call_operand.vmem [shape: f32[4,16,16], index: 8, kind: input, shape index: {}]   ;;  %s4997_s9 = inlined_call_operand.vmem [shape: f32[32,16], index: 9, kind: input, shape index: {}]   ;;  %s4998_s10 = inlined_call_operand.vmem [shape: f32[288,96], index: 10, kind: input, shape index: {}]   ;;  %s4999_s11 = inlined_call_operand.vmem [shape: f32[96,16], index: 11, kind: input, shape index: {}]   ;;  %s5000_s12 = inlined_call_operand.vmem [shape: f32[2,96,16], index: 12, kind: output, shape index: {}]  }
   0x1 LB: > { %s3272_s22 = sadd.s32 4294967295, %s4234_s21   ;;  %p3276_p0 = scmp.ge.s32.totalorder %s4234_s21, 1  ;;  %s4234_s21 = sphi %s4301_s21, %s22_s21  }
   0x2   : > { %p362_p1 = scmp.lt.s32.totalorder %s4234_s21, 3 }
   0x4   : > { %p363_p2 = pnand %p3276_p0, %p362_p1 }
   0x5   : > { %p404_p3 = scmp.lt.s32.totalorder (!%p363_p2), %s3272_s22, 1  ;;  %v426_v0 = vld [vmem:[%s4989_s1] sm:$0xff] (!%p363_p2)  ;;  %vm438_vm0 = vcmask (!%p363_p2), 261120   ;;  %v601_v15 = vld [vmem:[%s4990_s2 + $0x8] sm:$0xff] (!%p363_p2)  ;;  %v428_v19 = vld [vmem:[%s4989_s1 + $0x10] sm:$0xff] (!%p363_p2)  ;;  %vm602_vm1 = vcmask (!%p363_p2), 130048  }
   0x6   : > { %366 = sbr.rel (%p363_p2) target bundleno = 1229 (0x4cd), region = 68  ;;  %v812_v1 = vld [vmem:[%s4992_s4] sm:$0xff] (!%p363_p2)  ;;  %3683 = vmatprep.mubr.msk.f32.mxu0 (!%p363_p2), %vm438_vm0, %v426_v0  ;;  %v427_v17 = vld [vmem:[%s4989_s1 + $0x8] sm:$0xff] (!%p363_p2)  ;;  %v814_v20 = vld [vmem:[%s4992_s4 + $0x10] sm:$0xff] (!%p363_p2)  ;;  %vm2493_vm10 = vcmask (!%p363_p2), 785408  }
   0x7   : > { %3729 = vmatprep.mubr.msk.f32.mxu1 (!%p363_p2), %vm438_vm0, %v812_v1  ;;  %v600_v14 = vld [vmem:[%s4990_s2] sm:$0xff] (!%p363_p2)  ;;  %v813_v18 = vld [vmem:[%s4992_s4 + $0x8] sm:$0xff] (!%p363_p2)  ;;  %v429_v21 = vld [vmem:[%s4989_s1 + $0x18] sm:$0xff] (!%p363_p2) }
   0x8   : > { %v4341_v16 = vpack.c.bf16 (!%p363_p2), %v601_v15, %v600_v14  ;;  %v815_v22 = vld [vmem:[%s4992_s4 + $0x18] sm:$0xff] (!%p363_p2)  ;;  %v430_v23 = vld [vmem:[%s4989_s1 + $0x20] sm:$0xff] (!%p363_p2)  ;;  %v431_v25 = vld [vmem:[%s4989_s1 + $0x28] sm:$0xff] (!%p363_p2) }
   0x9   : > { %v816_v24 = vld [vmem:[%s4992_s4 + $0x20] sm:$0xff] (!%p363_p2)  ;;  %v817_v26 = vld [vmem:[%s4992_s4 + $0x28] sm:$0xff] (!%p363_p2)  ;;  %v432_v27 = vld [vmem:[%s4989_s1 + $0x30] sm:$0xff] (!%p363_p2) }
   0xa   : > { %v818_v28 = vld [vmem:[%s4992_s4 + $0x30] sm:$0xff] (!%p363_p2)  ;;  %v433_v29 = vld [vmem:[%s4989_s1 + $0x38] sm:$0xff] (!%p363_p2)  ;;  %v434_v31 = vld [vmem:[%s4989_s1 + $0x40] sm:$0xff] (!%p363_p2) }
   0xb   : > { %v819_v30 = vld [vmem:[%s4992_s4 + $0x38] sm:$0xff] (!%p363_p2)  ;;  %v820_v32 = vld [vmem:[%s4992_s4 + $0x40] sm:$0xff] (!%p363_p2)  ;;  %v435_v33 = vld [vmem:[%s4989_s1 + $0x48] sm:$0xff] (!%p363_p2) }
   0xc   : > { %v436_v34 = vld [vmem:[%s4989_s1 + $0x50] sm:$0xff] (!%p363_p2)  ;;  %v821_v35 = vld [vmem:[%s4992_s4 + $0x48] sm:$0xff] (!%p363_p2)  ;;  %v437_v37 = vld [vmem:[%s4989_s1 + $0x58] sm:$0xff] (!%p363_p2) }
   0xd   : > { %s5002_s22 = smov (!%p404_p3, %s3272_s22), 1  ;;  %v822_v36 = vld [vmem:[%s4992_s4 + $0x50] sm:$0xff]  ;;  %v823_v38 = vld [vmem:[%s4992_s4 + $0x58] sm:$0xff]  ;;  %v824_v39 = vld [vmem:[%s4992_s4 + $0x60] sm:$0xff] }
   0xe   : > { %s4211_s27 = smul.u32 96, %s5002_s22  ;;  %v825_v40 = vld [vmem:[%s4992_s4 + $0x68] sm:$0xff]  ;;  %v826_v41 = vld [vmem:[%s4992_s4 + $0x70] sm:$0xff]  ;;  %v827_v42 = vld [vmem:[%s4992_s4 + $0x78] sm:$0xff] }
   0xf   : > { %v3317_v43 = vld [vmem:[%s4993_s5 + $0x10] sm:$0xff]  ;;  %v3318_v44 = vld [vmem:[%s4993_s5 + $0x18] sm:$0xff]  ;;  %v1021_v48 = vld [vmem:[%s4993_s5] sm:$0xff] }
  0x10   : > { %s4325_s30 = scalar_lea.vmem %s4988_s0, %s4211_s27  ;;  %v4455_v45 = vpack.c.bf16 %v3318_v44, %v3317_v43  ;;  %v3295_v46 = vld [vmem:[%s4990_s2 + $0x10] sm:$0xff]  ;;  %v3296_v47 = vld [vmem:[%s4990_s2 + $0x18] sm:$0xff]  ;;  %v1022_v50 = vld [vmem:[%s4993_s5 + $0x8] sm:$0xff]  ;;  %s4921_s29 = scalar_lea.vmem %s5000_s12, %s4211_s27 }
  0x11   : > { %v414_v2 = vld [vmem:[%s4325_s30] sm:$0xff]  ;;  %v415_v3 = vld [vmem:[%s4325_s30 + $0x8] sm:$0xff]  ;;  %v416_v7 = vld [vmem:[%s4325_s30 + $0x10] sm:$0xff]  ;;  %v4468_v49 = vpack.c.bf16 %v3296_v47, %v3295_v46  ;;  %v4473_v51 = vpack.c.bf16 %v1022_v50, %v1021_v48 }
  0x12   : > { %v418_v4 = vld [vmem:[%s4325_s30 + $0x20] sm:$0xff]  ;;  %v4027_v5 = vpack.c.bf16 %v415_v3, %v414_v2  ;;  %v419_v6 = vld [vmem:[%s4325_s30 + $0x28] sm:$0xff]  ;;  %v417_v8 = vld [vmem:[%s4325_s30 + $0x18] sm:$0xff] }
  0x13   : > { %v4043_v9 = vpack.c.bf16 %v419_v6, %v418_v4  ;;  %v4031_v10 = vpack.c.bf16 %v417_v8, %v416_v7  ;;  %v420_v11 = vld [vmem:[%s4325_s30 + $0x30] sm:$0xff]  ;;  %v421_v12 = vld [vmem:[%s4325_s30 + $0x38] sm:$0xff]  ;;  %v3327_v52 = vld [vmem:[%s4993_s5 + $0x20] sm:$0xff] }
  0x14   : > { %4028 = vmatprep.subr.bf16.mxu0 %v4027_v5  ;;  %v4047_v13 = vpack.c.bf16 %v421_v12, %v420_v11  ;;  %v3328_v53 = vld [vmem:[%s4993_s5 + $0x28] sm:$0xff]  ;;  %v3333_v63 = vld [vmem:[%s4993_s5 + $0x30] sm:$0xff]  ;;  %v3334_v0 = vld [vmem:[%s4993_s5 + $0x38] sm:$0xff] }
  0x15   : > { %4044 = vmatprep.subr.bf16.mxu1 %v4043_v9  ;;  %4030 = vmatpush3.bf16.msra.mxu0 %v4027_v5  ;;  %v4059_v57 = vpack.c.bf16 %v3328_v53, %v3327_v52  ;;  %v4063_v3 = vpack.c.bf16 %v3334_v0, %v3333_v63  ;;  %v422_v14 = vld [vmem:[%s4325_s30 + $0x40] sm:$0xff]  ;;  %v423_v15 = vld [vmem:[%s4325_s30 + $0x48] sm:$0xff] }
  0x16   : > { %4046 = vmatpush3.bf16.msra.mxu1 %v4043_v9  ;;  %4032 = vmatprep.subr.bf16.mxu0 %v4031_v10  ;;  %v2042_v44 = vld [vmem:[%s4996_s8] sm:$0xff]  ;;  %v805_v47 = vld [vmem:[%s4991_s3 + $0x8] sm:$0xff] }
  0x17   : > { %4048 = vmatprep.subr.bf16.mxu1 %v4047_v13  ;;  %v804_v48 = vld [vmem:[%s4991_s3] sm:$0xff] }
  0x19   : > { %4034 = vmatpush3.bf16.msra.mxu0 %v4031_v10 }
  0x1a   : > { %4050 = vmatpush3.bf16.msra.mxu1 %v4047_v13  ;;  %4036 = vmatprep.subr.bf16.mxu0 %v4341_v16 }
  0x1b   : > { %4052 = vmatprep.subr.bf16.mxu1 %v4455_v45 }
  0x1c   : > { %3684 = vmatmul.mubr.msk.f32.vlgmr.msra.gmra.mrb[0].mxu0 %vm438_vm0, %v427_v17 }
  0x1d   : > { %3730 = vmatmul.mubr.msk.f32.vlgmr.msra.gmra.mrb[0].mxu1 %vm438_vm0, %v813_v18  ;;  %3686 = vmatprep.mubr.msk.f32.mxu0 %vm438_vm0, %v428_v19  ;;  %v4083_v19 = vpack.c.bf16 %v423_v15, %v422_v14 }
  0x1e   : > { %3732 = vmatprep.mubr.msk.f32.mxu1 %vm438_vm0, %v814_v20  ;;  %4038 = vmatpush3.bf16.msra.mxu0 %v4341_v16 }
  0x1f   : > { %4054 = vmatpush3.bf16.msra.mxu1 %v4455_v45  ;;  %4040 = vmatprep.subr.bf16.mxu0 %v4468_v49 }
  0x20   : > { %3687 = vmatmul.mubr.msk.f32.gmra.mrb[2].mxu0 %vm438_vm0, %v429_v21  ;;  %4056 = vmatprep.subr.bf16.mxu1 %v4473_v51 }
  0x21   : > { %3733 = vmatmul.mubr.msk.f32.gmra.mrb[2].mxu1 %vm438_vm0, %v815_v22  ;;  %3689 = vmatprep.mubr.msk.f32.mxu0 %vm438_vm0, %v430_v23  ;;  %v424_v22 = vld [vmem:[%s4325_s30 + $0x50] sm:$0xff]  ;;  %v425_v23 = vld [vmem:[%s4325_s30 + $0x58] sm:$0xff] }
  0x22   : > { %3735 = vmatprep.mubr.msk.f32.mxu1 %vm438_vm0, %v816_v24  ;;  %v4087_v24 = vpack.c.bf16 %v425_v23, %v424_v22  ;;  %v1429_v22 = vld [vmem:[%s4994_s6 + $0x8] sm:$0xff] }
  0x24   : > { %3690 = vmatmul.mubr.msk.f32.gmra.mrb[4].mxu0 %vm438_vm0, %v431_v25  ;;  %v1833_v25 = vld [vmem:[%s4995_s7] sm:$0xff] }
  0x25   : > { %3736 = vmatmul.mubr.msk.f32.gmra.mrb[4].mxu1 %vm438_vm0, %v817_v26  ;;  %3692 = vmatprep.mubr.msk.f32.mxu0 %vm438_vm0, %v432_v27  ;;  %v1834_v26 = vld [vmem:[%s4995_s7 + $0x8] sm:$0xff]  ;;  %v1835_v27 = vld [vmem:[%s4995_s7 + $0x10] sm:$0xff] }
  0x26   : > { %3738 = vmatprep.mubr.msk.f32.mxu1 %vm438_vm0, %v818_v28  ;;  %v1836_v28 = vld [vmem:[%s4995_s7 + $0x18] sm:$0xff] }
  0x28   : > { %3693 = vmatmul.mubr.msk.f32.gmra.mrb[6].mxu0 %vm438_vm0, %v433_v29  ;;  %v1837_v29 = vld [vmem:[%s4995_s7 + $0x20] sm:$0xff] }
  0x29   : > { %3739 = vmatmul.mubr.msk.f32.gmra.mrb[6].mxu1 %vm438_vm0, %v819_v30  ;;  %3695 = vmatprep.mubr.msk.f32.mxu0 %vm438_vm0, %v434_v31  ;;  %v1838_v30 = vld [vmem:[%s4995_s7 + $0x28] sm:$0xff]  ;;  %v1839_v31 = vld [vmem:[%s4995_s7 + $0x30] sm:$0xff] }
  0x2a   : > { %3741 = vmatprep.mubr.msk.f32.mxu1 %vm438_vm0, %v820_v32  ;;  %v1840_v32 = vld [vmem:[%s4995_s7 + $0x38] sm:$0xff] }
  0x2c   : > { %3696 = vmatmul.mubr.msk.f32.gmra.mrb[8].mxu0 %vm438_vm0, %v435_v33  ;;  %v1841_v33 = vld [vmem:[%s4995_s7 + $0x40] sm:$0xff] }
  0x2d   : > { %3698 = vmatprep.mubr.msk.f32.mxu0 %vm438_vm0, %v436_v34  ;;  %3742 = vmatmul.mubr.msk.f32.gmra.mrb[8].mxu1 %vm438_vm0, %v821_v35  ;;  %v1842_v34 = vld [vmem:[%s4995_s7 + $0x48] sm:$0xff]  ;;  %v1843_v35 = vld [vmem:[%s4995_s7 + $0x50] sm:$0xff] }
  0x2e   : > { %3744 = vmatprep.mubr.msk.f32.mxu1 %vm438_vm0, %v822_v36  ;;  %v1844_v36 = vld [vmem:[%s4995_s7 + $0x58] sm:$0xff] }
  0x30   : > { %3699 = vmatmul.mubr.msk.f32.gmra.mrb[10].mxu0 %vm438_vm0, %v437_v37  ;;  %v1845_v37 = vld [vmem:[%s4995_s7 + $0x60] sm:$0xff] }
  0x31   : > { %3745 = vmatmul.mubr.msk.f32.gmra.mrb[10].mxu1 %vm438_vm0, %v823_v38  ;;  %v1846_v38 = vld [vmem:[%s4995_s7 + $0x68] sm:$0xff] }
  0x32   : > { %3747 = vmatprep.mubr.msk.f32.mxu1 %vm438_vm0, %v824_v39  ;;  %v1847_v39 = vld [vmem:[%s4995_s7 + $0x70] sm:$0xff] }
  0x35   : > { %3748 = vmatmul.mubr.msk.f32.gmra.mrb[12].mxu1 %vm438_vm0, %v825_v40  ;;  %v1848_v40 = vld [vmem:[%s4995_s7 + $0x78] sm:$0xff] }
  0x36   : > { %3750 = vmatprep.mubr.msk.f32.mxu1 %vm438_vm0, %v826_v41  ;;  %v3375_v41 = vld [vmem:[%s4996_s8 + $0x10] sm:$0xff] }
  0x39   : > { %3751 = vmatmul.mubr.msk.f32.gmra.mrb[14].mxu1 %vm438_vm0, %v827_v42  ;;  %v3376_v42 = vld [vmem:[%s4996_s8 + $0x18] sm:$0xff] }
  0x3a   : > { %v4091_v43 = vpack.c.bf16 %v3376_v42, %v3375_v41 }
  0xef   : > { %v3685_v54 = vpop.f32.mrb[0].mxu0 }
  0xf0   : > { %v541_v55 = vpop.f32.mrb[1].mxu0  ;;  %v4483_v56 = vpop.f32.mrb[0].mxu1 }
  0xf1   : > { %3705 = vmatprep.mubr.msk.f32.mxu0 %vm602_vm1, %v541_v55  ;;  %v4486_v58 = vpop.f32.mrb[1].mxu1 }
  0xf2   : > { %3706 = vmatmul.mubr.msk.f32.vlgmr.msra.gmra.mrb[4].mxu0 %vm602_vm1, %v3685_v54 }
  0xf3   : > { %v3688_v59 = vpop.f32.mrb[2].mxu0  ;;  %4042 = vmatpush3.bf16.msra.mxu0 %v4468_v49 }
  0xf4   : > { %v551_v60 = vpop.f32.mrb[3].mxu0  ;;  %v4490_v61 = vpop.f32.mrb[2].mxu1  ;;  %4060 = vmatprep.subr.bf16.mxu0 %v4059_v57 }
  0xf5   : > { %3708 = vmatprep.mubr.msk.f32.mxu0 %vm602_vm1, %v551_v60  ;;  %v952_v62 = vpop.f32.mrb[3].mxu1 }
  0xf6   : > { %3709 = vmatmul.mubr.msk.f32.gmra.mrb[6].mxu0 %vm602_vm1, %v3688_v59 }
  0xf8   : > { %v3737_v1 = vpop.f32.mrb[4].mxu1 }
  0xf9   : > { %v962_v2 = vpop.f32.mrb[5].mxu1 }
  0xfa   : > { %3757 = vmatprep.mubr.msk.f32.mxu1 %vm602_vm1, %v962_v2 }
  0xfb   : > { %3758 = vmatmul.mubr.msk.f32.vlgmr.msra.gmra.mrb[16].mxu1 %vm602_vm1, %v3737_v1 }
  0xfc   : > { %v3740_v4 = vpop.f32.mrb[6].mxu1  ;;  %4058 = vmatpush3.bf16.msra.mxu1 %v4473_v51 }
  0xfd   : > { %v972_v5 = vpop.f32.mrb[7].mxu1  ;;  %4068 = vmatprep.subr.bf16.mxu1 %v4063_v3 }
  0xfe   : > { %3760 = vmatprep.mubr.msk.f32.mxu1 %vm602_vm1, %v972_v5 }
  0xff   : > { %3761 = vmatmul.mubr.msk.f32.gmra.mrb[18].mxu1 %vm602_vm1, %v3740_v4  ;;  %v3697_v6 = vpop.f32.mrb[8].mxu0 }
 0x100   : > { %3767 = vmatprep.mubr.msk.f32.mxu1 %vm602_vm1, %v4486_v58  ;;  %v581_v7 = vpop.f32.mrb[9].mxu0  ;;  %v3743_v8 = vpop.f32.mrb[8].mxu1 }
 0x101   : > { %3715 = vmatprep.mubr.msk.f32.mxu0 %vm602_vm1, %v581_v7  ;;  %v982_v9 = vpop.f32.mrb[9].mxu1 }
 0x102   : > { %3716 = vmatmul.mubr.msk.f32.vlgmr.msra.gmra.mrb[4].mxu0 %vm602_vm1, %v3697_v6 }
 0x103   : > { %3768 = vmatmul.mubr.msk.f32.vlgmr.msra.gmra.mrb[16].mxu1 %vm602_vm1, %v4483_v56  ;;  %v3700_v10 = vpop.f32.mrb[10].mxu0  ;;  %4062 = vmatpush3.bf16.msra.mxu0 %v4059_v57 }
 0x104   : > { %3770 = vmatprep.mubr.msk.f32.mxu1 %vm602_vm1, %v952_v62  ;;  %v591_v11 = vpop.f32.mrb[11].mxu0  ;;  %4070 = vmatpush3.bf16.msra.mxu1 %v4063_v3  ;;  %v3746_v12 = vpop.f32.mrb[10].mxu1 }
 0x105   : > { %3718 = vmatprep.mubr.msk.f32.mxu0 %vm602_vm1, %v591_v11  ;;  %v992_v13 = vpop.f32.mrb[11].mxu1  ;;  %4064 = vmatprep.subr.bf16.mxu0 %v4063_v3 }
 0x106   : > { %3719 = vmatmul.mubr.msk.f32.gmra.mrb[6].mxu0 %vm602_vm1, %v3700_v10  ;;  %4072 = vmatprep.subr.bf16.mxu1 %v4059_v57 }
 0x107   : > { %3771 = vmatmul.mubr.msk.f32.gmra.mrb[18].mxu1 %vm602_vm1, %v4490_v61  ;;  %3777 = vmatprep.mubr.msk.f32.mxu0 %vm602_vm1, %v982_v9 }
 0x108   : > { %3797 = vmatprep.mubr.msk.f32.mxu1 %vm602_vm1, %v962_v2  ;;  %v3749_v17 = vpop.f32.mrb[12].mxu1 }
 0x109   : > { %v1002_v18 = vpop.f32.mrb[13].mxu1 }
 0x10a   : > { %3778 = vmatmul.mubr.msk.f32.vlgmr.msra.gmra.mrb[12].mxu0 %vm602_vm1, %v3743_v8 }
 0x10b   : > { %3798 = vmatmul.mubr.msk.f32.vlgmr.msra.gmra.mrb[20].mxu1 %vm602_vm1, %v3737_v1  ;;  %3780 = vmatprep.mubr.msk.f32.mxu0 %vm602_vm1, %v992_v13 }
 0x10c   : > { %3800 = vmatprep.mubr.msk.f32.mxu1 %vm602_vm1, %v972_v5  ;;  %4066 = vmatpush3.bf16.msra.mxu0 %v4063_v3  ;;  %v3752_v20 = vpop.f32.mrb[14].mxu1 }
 0x10d   : > { %4074 = vmatpush3.bf16.msra.mxu1 %v4059_v57  ;;  %4084 = vmatprep.subr.bf16.mxu0 %v4083_v19  ;;  %v1012_v21 = vpop.f32.mrb[15].mxu1  ;;  %v806_v57 = vld [vmem:[%s4991_s3 + $0x10] sm:$0xff] }
 0x10e   : > { %3781 = vmatmul.mubr.msk.f32.gmra.mrb[14].mxu0 %vm602_vm1, %v3746_v12  ;;  %4076 = vmatprep.subr.bf16.mxu1 %v4473_v51 }
 0x10f   : > { %3801 = vmatmul.mubr.msk.f32.gmra.mrb[22].mxu1 %vm602_vm1, %v3740_v4  ;;  %3787 = vmatprep.mubr.msk.f32.mxu0 %vm602_vm1, %v1002_v18 }
 0x110   : > { %3807 = vmatprep.mubr.msk.f32.mxu1 %vm602_vm1, %v4486_v58 }
 0x112   : > { %3788 = vmatmul.mubr.msk.f32.vlgmr.msra.gmra.mrb[16].mxu0 %vm602_vm1, %v3749_v17 }
 0x113   : > { %3808 = vmatmul.mubr.msk.f32.vlgmr.msra.gmra.mrb[20].mxu1 %vm602_vm1, %v4483_v56  ;;  %4086 = vmatpush3.bf16.msra.mxu0 %v4083_v19  ;;  %v807_v56 = vld [vmem:[%s4991_s3 + $0x18] sm:$0xff] }
 0x114   : > { %3810 = vmatprep.mubr.msk.f32.mxu1 %vm602_vm1, %v952_v62  ;;  %3790 = vmatprep.mubr.msk.f32.mxu0 %vm602_vm1, %v1012_v21 }
 0x115   : > { %4088 = vmatprep.subr.bf16.mxu0 %v4087_v24  ;;  %4078 = vmatpush3.bf16.msra.mxu1 %v4473_v51 }
 0x116   : > { %3791 = vmatmul.mubr.msk.f32.gmra.mrb[18].mxu0 %vm602_vm1, %v3752_v20  ;;  %4080 = vmatprep.subr.bf16.mxu1 %v4455_v45 }
 0x117   : > { %3811 = vmatmul.mubr.msk.f32.gmra.mrb[22].mxu1 %vm602_vm1, %v4490_v61  ;;  %4090 = vmatpush3.bf16.msra.mxu0 %v4087_v24  ;;  %v1428_v24 = vld [vmem:[%s4994_s6] sm:$0xff] }
 0x118   : > { %3817 = vmatprep.mubr.msk.f32.mxu1 %vm602_vm1, %v982_v9  ;;  %3841 = vmatprep.mubr.msk.f32.mxu0 %vm438_vm0, %v1833_v25  ;;  %v3385_v25 = vld [vmem:[%s4996_s8 + $0x20] sm:$0xff] }
 0x11a   : > { %3842 = vmatmul.mubr.msk.f32.vlgmr.msra.gmra.mrb[20].mxu0 %vm438_vm0, %v1834_v26  ;;  %v3386_v26 = vld [vmem:[%s4996_s8 + $0x28] sm:$0xff] }
 0x11b   : > { %3818 = vmatmul.mubr.msk.f32.vlgmr.msra.gmra.mrb[20].mxu1 %vm602_vm1, %v3743_v8  ;;  %3844 = vmatprep.mubr.msk.f32.mxu0 %vm438_vm0, %v1835_v27  ;;  %v3356_v27 = vld [vmem:[%s4994_s6 + $0x28] sm:$0xff] }
 0x11c   : > { %3820 = vmatprep.mubr.msk.f32.mxu1 %vm602_vm1, %v992_v13  ;;  %4082 = vmatpush3.bf16.msra.mxu1 %v4455_v45  ;;  %v2043_v45 = vld [vmem:[%s4996_s8 + $0x8] sm:$0xff] }
 0x11d   : > { %4092 = vmatprep.subr.bf16.mxu1 %v4091_v43  ;;  %v4627_v46 = vpack.c.bf16 %v2043_v45, %v2042_v44  ;;  %v3357_v45 = vld [vmem:[%s4994_s6 + $0x30] sm:$0xff] }
 0x11e   : > { %3845 = vmatmul.mubr.msk.f32.gmra.mrb[22].mxu0 %vm438_vm0, %v1836_v28 }
 0x11f   : > { %3821 = vmatmul.mubr.msk.f32.gmra.mrb[22].mxu1 %vm602_vm1, %v3746_v12  ;;  %3847 = vmatprep.mubr.msk.f32.mxu0 %vm438_vm0, %v1837_v29 }
 0x120   : > { %3827 = vmatprep.mubr.msk.f32.mxu1 %vm602_vm1, %v1002_v18 }
 0x122   : > { %3848 = vmatmul.mubr.msk.f32.gmra.mrb[24].mxu0 %vm438_vm0, %v1838_v30  ;;  %v3355_v30 = vld [vmem:[%s4994_s6 + $0x20] sm:$0xff] }
 0x123   : > { %3828 = vmatmul.mubr.msk.f32.vlgmr.msra.gmra.mrb[20].mxu1 %vm602_vm1, %v3749_v17  ;;  %3850 = vmatprep.mubr.msk.f32.mxu0 %vm438_vm0, %v1839_v31 }
 0x124   : > { %3830 = vmatprep.mubr.msk.f32.mxu1 %vm602_vm1, %v1012_v21  ;;  %4094 = vmatpush3.bf16.msra.mxu1 %v4091_v43 }
 0x125   : > { %4096 = vmatprep.subr.bf16.mxu1 %v4627_v46 }
 0x126   : > { %3851 = vmatmul.mubr.msk.f32.gmra.mrb[26].mxu0 %vm438_vm0, %v1840_v32  ;;  %v1431_v32 = vld [vmem:[%s4994_s6 + $0x18] sm:$0xff] }
 0x127   : > { %3831 = vmatmul.mubr.msk.f32.gmra.mrb[22].mxu1 %vm602_vm1, %v3752_v20  ;;  %3853 = vmatprep.mubr.msk.f32.mxu0 %vm438_vm0, %v1841_v33 }
 0x12a   : > { %3854 = vmatmul.mubr.msk.f32.gmra.mrb[28].mxu0 %vm438_vm0, %v1842_v34 }
 0x12b   : > { %3856 = vmatprep.mubr.msk.f32.mxu0 %vm438_vm0, %v1843_v35  ;;  %v4099_v35 = vpack.c.bf16 %v3386_v26, %v3385_v25 }
 0x12e   : > { %3857 = vmatmul.mubr.msk.f32.gmra.mrb[30].mxu0 %vm438_vm0, %v1844_v36  ;;  %v1430_v36 = vld [vmem:[%s4994_s6 + $0x10] sm:$0xff] }
 0x12f   : > { %3859 = vmatprep.mubr.msk.f32.mxu0 %vm438_vm0, %v1845_v37 }
 0x132   : > { %3860 = vmatmul.mubr.msk.f32.gmra.mrb[32].mxu0 %vm438_vm0, %v1846_v38 }
 0x133   : > { %3862 = vmatprep.mubr.msk.f32.mxu0 %vm438_vm0, %v1847_v39 }
 0x136   : > { %3863 = vmatmul.mubr.msk.f32.gmra.mrb[34].mxu0 %vm438_vm0, %v1848_v40  ;;  %v3358_v40 = vld [vmem:[%s4994_s6 + $0x38] sm:$0xff] }
 0x1d5   : > { %v3717_v50 = vpop.f32.mrb[4].mxu0 }
 0x1d6   : > { %v809_v51 = vadd.f32 %v3717_v50, %v805_v47  ;;  %v3769_v52 = vpop.f32.mrb[16].mxu1  ;;  %v781_v53 = vpop.f32.mrb[5].mxu0 }
 0x1d7   : > { %v808_v54 = vadd.f32 %v804_v48, %v781_v53  ;;  %v1201_v55 = vpop.f32.mrb[17].mxu1 }
 0x1d9   : > { %v4642_v58 = vpack.c.bf16 %v809_v51, %v808_v54  ;;  %v3720_v59 = vpop.f32.mrb[6].mxu0 }
 0x1da   : > { %v811_v60 = vadd.f32 %v3720_v59, %v807_v56  ;;  %v3772_v61 = vpop.f32.mrb[18].mxu1  ;;  %v791_v62 = vpop.f32.mrb[7].mxu0  ;;  %v3391_v56 = vld [vmem:[%s4996_s8 + $0x30] sm:$0xff] }
 0x1db   : > { %v810_v63 = vadd.f32 %v806_v57, %v791_v62  ;;  %v1211_v0 = vpop.f32.mrb[19].mxu1  ;;  %4108 = vmatprep.subr.bf16.mxu0 %v4642_v58  ;;  %v3392_v57 = vld [vmem:[%s4996_s8 + $0x38] sm:$0xff] }
 0x1dc   : > { %4110 = vmatpush3.bf16.msra.mxu0 %v4642_v58 }
 0x1dd   : > { %v4646_v1 = vpack.c.bf16 %v811_v60, %v810_v63  ;;  %v3779_v2 = vpop.f32.mrb[12].mxu0 }
 0x1de   : > { %v1321_v3 = vsub.f32 %v3769_v52, %v3779_v2  ;;  %v1301_v4 = vpop.f32.mrb[13].mxu0 }
 0x1df   : > { %v1320_v5 = vsub.f32 %v1201_v55, %v1301_v4  ;;  %4112 = vmatprep.subr.bf16.mxu0 %v4646_v1 }
 0x1e0   : > { %4114 = vmatpush3.bf16.msra.mxu0 %v4646_v1 }
 0x1e1   : > { %v3782_v6 = vpop.f32.mrb[14].mxu0 }
 0x1e2   : > { %v1323_v7 = vsub.f32 %v3772_v61, %v3782_v6  ;;  %v1311_v8 = vpop.f32.mrb[15].mxu0 }
 0x1e3   : > { %v1322_v9 = vsub.f32 %v1211_v0, %v1311_v8 }
 0x1e5   : > { %v3789_v10 = vpop.f32.mrb[16].mxu0 }
 0x1e6   : > { %v1425_v11 = vsub.f32 %v1321_v3, %v3789_v10  ;;  %v1405_v12 = vpop.f32.mrb[17].mxu0  ;;  %v4103_v3 = vpack.c.bf16 %v3392_v57, %v3391_v56  ;;  %v2476_v56 = vld [vmem:[%s4998_s10 + $0x98] sm:$0xff]  ;;  %v2461_v57 = vld [vmem:[%s4998_s10 + $0x20] sm:$0xff] }
 0x1e7   : > { %v1424_v13 = vsub.f32 %v1320_v5, %v1405_v12 }
 0x1e8   : > { %v1433_v28 = vadd.f32 %v1429_v22, %v1425_v11 }
 0x1e9   : > { %v3792_v14 = vpop.f32.mrb[18].mxu0  ;;  %v1432_v31 = vadd.f32 %v1428_v24, %v1424_v13 }
 0x1ea   : > { %v1427_v15 = vsub.f32 %v1323_v7, %v3792_v14  ;;  %v1415_v17 = vpop.f32.mrb[19].mxu0  ;;  %v1794_v41 = vmul.f32 %v1433_v28, %v1433_v28 }
 0x1eb   : > { %v1426_v18 = vsub.f32 %v1322_v9, %v1415_v17  ;;  %v1793_v47 = vmul.f32 %v1432_v31, %v1432_v31 }
 0x1ec   : > { %v1435_v42 = vadd.f32 %v1431_v32, %v1427_v15 }
 0x1ed   : > { %v3843_v19 = vpop.f32.mrb[20].mxu0  ;;  %v1434_v48 = vadd.f32 %v1430_v36, %v1426_v18  ;;  %v2449_v36 = vld [vmem:[%s4997_s9] sm:$0xff] }
 0x1ee   : > { %v1963_v20 = vpop.f32.mrb[21].mxu0  ;;  %v1796_v60 = vmul.f32 %v1435_v42, %v1435_v42  ;;  %v2451_v42 = vld [vmem:[%s4997_s9 + $0x10] sm:$0xff] }
 0x1ef   : > { %v1795_v63 = vmul.f32 %v1434_v48, %v1434_v48 }
 0x1f1   : > { %v4650_v21 = vpop.f32.mrb[22].mxu0 }
 0x1f2   : > { %v1973_v23 = vpop.f32.mrb[23].mxu0 }
 0x1f5   : > { %v3849_v29 = vpop.f32.mrb[24].mxu0 }
 0x1f6   : > { %v3829_v33 = vpop.f32.mrb[20].mxu1  ;;  %v1983_v34 = vpop.f32.mrb[25].mxu0 }
 0x1f7   : > { %v1790_v37 = vadd.f32 %v3829_v33, %v3356_v27  ;;  %v1761_v38 = vpop.f32.mrb[21].mxu1  ;;  %3869 = vmatprep.mubr.msk.f32.mxu1 %vm602_vm1, %v1983_v34 }
 0x1f8   : > { %v1789_v39 = vadd.f32 %v3355_v30, %v1761_v38  ;;  %3870 = vmatmul.mubr.msk.f32.vlgmr.msra.gmra.mrb[24].mxu1 %vm602_vm1, %v3849_v29 }
 0x1f9   : > { %v1798_v43 = vmul.f32 %v1790_v37, %v1790_v37  ;;  %v3852_v44 = vpop.f32.mrb[26].mxu0  ;;  %4098 = vmatpush3.bf16.msra.mxu1 %v4627_v46 }
 0x1fa   : > { %v1797_v50 = vmul.f32 %v1789_v39, %v1789_v39  ;;  %v3832_v51 = vpop.f32.mrb[22].mxu1  ;;  %v1993_v52 = vpop.f32.mrb[27].mxu0  ;;  %4100 = vmatprep.subr.bf16.mxu1 %v4099_v35 }
 0x1fb   : > { %v1802_v53 = vadd.f32 %v1798_v43, %v1794_v41  ;;  %v1792_v54 = vadd.f32 %v3832_v51, %v3358_v40  ;;  %v1771_v55 = vpop.f32.mrb[23].mxu1  ;;  %3872 = vmatprep.mubr.msk.f32.mxu1 %vm602_vm1, %v1993_v52  ;;  %v2452_v41 = vld [vmem:[%s4997_s9 + $0x18] sm:$0xff]  ;;  %v2458_v51 = vld [vmem:[%s4998_s10 + $0x8] sm:$0xff] }
 0x1fc   : > { %v1801_v46 = vadd.f32 %v1797_v50, %v1793_v47  ;;  %v1791_v59 = vadd.f32 %v3357_v45, %v1771_v55  ;;  %3873 = vmatmul.mubr.msk.f32.gmra.mrb[26].mxu1 %vm602_vm1, %v3852_v44  ;;  %v2474_v52 = vld [vmem:[%s4998_s10 + $0x88] sm:$0xff]  ;;  %v2460_v55 = vld [vmem:[%s4998_s10 + $0x18] sm:$0xff] }
 0x1fd   : > { %4220 = vrsqrt.f32 %v1802_v53  ;;  %v1800_v61 = vmul.f32 %v1792_v54, %v1792_v54  ;;  %3879 = vmatprep.mubr.msk.f32.mxu1 %vm602_vm1, %v1963_v20  ;;  %v3855_v62 = vpop.f32.mrb[28].mxu0  ;;  %vm1814_vm2 = vcmp.eq.f32.partialorder %v1802_v53, inf  ;;  %v1817_v14 = vand.u32 2147483648, %v1802_v53  ;;  %v2475_v54 = vld [vmem:[%s4998_s10 + $0x90] sm:$0xff] }
 0x1fe   : > { %4222 = vrsqrt.f32 %v1801_v46  ;;  %v1799_v0 = vmul.f32 %v1791_v59, %v1791_v59  ;;  %v2003_v2 = vpop.f32.mrb[29].mxu0  ;;  %vm1807_vm3 = vcmp.eq.f32.partialorder %v1801_v46, inf  ;;  %v1810_v17 = vand.u32 2147483648, %v1801_v46  ;;  %v2462_v59 = vld [vmem:[%s4998_s10 + $0x28] sm:$0xff] }
 0x1ff   : > { %v1804_v4 = vadd.f32 %v1800_v61, %v1796_v60  ;;  %vm1816_vm4 = vcmp.eq.f32.partialorder %v1802_v53, 0.0  ;;  %vm1809_vm5 = vcmp.eq.f32.partialorder %v1801_v46, 0.0  ;;  %v2478_v60 = vld [vmem:[%s4998_s10 + $0xa8] sm:$0xff]  ;;  %v2479_v61 = vld [vmem:[%s4998_s10 + $0xb0] sm:$0xff] }
 0x200   : > { %v1803_v5 = vadd.f32 %v1799_v0, %v1795_v63  ;;  %3880 = vmatmul.mubr.msk.f32.vlgmr.msra.gmra.mrb[24].mxu1 %vm602_vm1, %v3843_v19  ;;  %v2480_v63 = vld [vmem:[%s4998_s10 + $0xb8] sm:$0xff]  ;;  %v2465_v0 = vld [vmem:[%s4998_s10 + $0x40] sm:$0xff] }
 0x201   : > { %4224 = vrsqrt.f32 %v1804_v4  ;;  %3882 = vmatprep.mubr.msk.f32.mxu1 %vm602_vm1, %v1973_v23  ;;  %4102 = vmatpush3.bf16.msra.mxu1 %v4099_v35  ;;  %v3858_v6 = vpop.f32.mrb[30].mxu0  ;;  %vm1828_vm6 = vcmp.eq.f32.partialorder %v1804_v4, inf  ;;  %v1831_v28 = vand.u32 2147483648, %v1804_v4  ;;  %vm1830_vm8 = vcmp.eq.f32.partialorder %v1804_v4, 0.0  ;;  %v2457_v35 = vld [vmem:[%s4998_s10] sm:$0xff] }
 0x202   : > { %4226 = vrsqrt.f32 %v1803_v5  ;;  %4104 = vmatprep.subr.bf16.mxu1 %v4103_v3  ;;  %v2013_v7 = vpop.f32.mrb[31].mxu0  ;;  %vm1821_vm7 = vcmp.eq.f32.partialorder %v1803_v5, inf  ;;  %v1824_v29 = vand.u32 2147483648, %v1803_v5  ;;  %vm1823_vm9 = vcmp.eq.f32.partialorder %v1803_v5, 0.0  ;;  %3929 = vmatprep.mubr.msk.f32.mxu0 %vm2493_vm10, %v2457_v35 }
 0x204   : > { %3883 = vmatmul.mubr.msk.f32.gmra.mrb[26].mxu1 %vm602_vm1, %v4650_v21 }
 0x205   : > { %3889 = vmatprep.mubr.msk.f32.mxu1 %vm602_vm1, %v2003_v2  ;;  %v3861_v8 = vpop.f32.mrb[32].mxu0  ;;  %v2481_v2 = vld [vmem:[%s4998_s10 + $0xc0] sm:$0xff] }
 0x206   : > { %v2023_v9 = vpop.f32.mrb[33].mxu0 }
 0x207   : > { %v4221_v10 = vpop.eup %4220 }
 0x208   : > { %v4223_v11 = vpop.eup %4222  ;;  %3890 = vmatmul.mubr.msk.f32.vlgmr.msra.gmra.mrb[24].mxu1 %vm602_vm1, %v3855_v62  ;;  %v1813_v12 = vmul.f32 %v4221_v10, %v1802_v53  ;;  %v2464_v62 = vld [vmem:[%s4998_s10 + $0x38] sm:$0xff]  ;;  %v2469_v10 = vld [vmem:[%s4998_s10 + $0x60] sm:$0xff] }
 0x209   : > { %4106 = vmatpush3.bf16.msra.mxu1 %v4103_v3  ;;  %3892 = vmatprep.mubr.msk.f32.mxu1 %vm602_vm1, %v2013_v7  ;;  %v1806_v13 = vmul.f32 %v4223_v11, %v1801_v46  ;;  %v3864_v15 = vpop.f32.mrb[34].mxu0  ;;  %v2466_v3 = vld [vmem:[%s4998_s10 + $0x48] sm:$0xff]  ;;  %v2468_v7 = vld [vmem:[%s4998_s10 + $0x58] sm:$0xff] }
 0x20a   : > { %4139 = vmatprep.subr.bf16.mxu1 %v4642_v58  ;;  %v1815_v18 = vsel %vm1814_vm2, %v1802_v53, %v1813_v12  ;;  %v2033_v19 = vpop.f32.mrb[35].mxu0  ;;  %v2459_v53 = vld [vmem:[%s4998_s10 + $0x10] sm:$0xff]  ;;  %v2486_v11 = vld [vmem:[%s4998_s10 + $0xe8] sm:$0xff] }
 0x20b   : > { %v4225_v20 = vpop.eup %4224  ;;  %v1808_v21 = vsel %vm1807_vm3, %v1801_v46, %v1806_v13  ;;  %v1818_v22 = vsel %vm1816_vm4, %v1817_v14, %v1815_v18  ;;  %v2477_v46 = vld [vmem:[%s4998_s10 + $0xa0] sm:$0xff]  ;;  %v2470_v12 = vld [vmem:[%s4998_s10 + $0x68] sm:$0xff]  ;;  %v2487_v13 = vld [vmem:[%s4998_s10 + $0xf0] sm:$0xff] }
 0x20c   : > { %v4227_v23 = vpop.eup %4226  ;;  %3893 = vmatmul.mubr.msk.f32.gmra.mrb[26].mxu1 %vm602_vm1, %v3858_v6  ;;  %v1811_v24 = vsel %vm1809_vm5, %v1810_v17, %v1808_v21  ;;  %v1827_v25 = vmul.f32 %v4225_v20, %v1804_v4  ;;  %v2483_v6 = vld [vmem:[%s4998_s10 + $0xd0] sm:$0xff]  ;;  %v2472_v17 = vld [vmem:[%s4998_s10 + $0x78] sm:$0xff]  ;;  %v2489_v18 = vld [vmem:[%s4998_s10 + $0x100] sm:$0xff] }
 0x20d   : > { %3899 = vmatprep.mubr.msk.f32.mxu1 %vm602_vm1, %v2023_v9  ;;  %v4115_v26 = vpack.c.bf16 %v1818_v22, %v1811_v24  ;;  %v1820_v27 = vmul.f32 %v4227_v23, %v1803_v5  ;;  %v2485_v9 = vld [vmem:[%s4998_s10 + $0xe0] sm:$0xff]  ;;  %v2471_v14 = vld [vmem:[%s4998_s10 + $0x70] sm:$0xff]  ;;  %v2492_v21 = vld [vmem:[%s4998_s10 + $0x118] sm:$0xff] }
 0x20e   : > { %v1829_v30 = vsel %vm1828_vm6, %v1804_v4, %v1827_v25  ;;  %v2482_v4 = vld [vmem:[%s4998_s10 + $0xc8] sm:$0xff]  ;;  %v2491_v20 = vld [vmem:[%s4998_s10 + $0x110] sm:$0xff] }
 0x20f   : > { %4116 = vmatprep.subr.bf16.mxu0 %v4115_v26  ;;  %v1822_v31 = vsel %vm1821_vm7, %v1803_v5, %v1820_v27  ;;  %v1832_v32 = vsel %vm1830_vm8, %v1831_v28, %v1829_v30  ;;  %v2467_v5 = vld [vmem:[%s4998_s10 + $0x50] sm:$0xff] }
 0x210   : > { %4118 = vmatpush3.bf16.msra.mxu0 %v4115_v26  ;;  %3900 = vmatmul.mubr.msk.f32.vlgmr.msra.gmra.mrb[24].mxu1 %vm602_vm1, %v3861_v8  ;;  %v1825_v33 = vsel %vm1823_vm9, %v1824_v29, %v1822_v31  ;;  %v2484_v8 = vld [vmem:[%s4998_s10 + $0xd8] sm:$0xff] }
 0x211   : > { %4145 = vmatpush3.bf16.msra.mxu1 %v4642_v58  ;;  %v4119_v34 = vpack.c.bf16 %v1832_v32, %v1825_v33  ;;  %3902 = vmatprep.mubr.msk.f32.mxu1 %vm602_vm1, %v2033_v19  ;;  %v2473_v58 = vld [vmem:[%s4998_s10 + $0x80] sm:$0xff]  ;;  %v2490_v19 = vld [vmem:[%s4998_s10 + $0x108] sm:$0xff] }
 0x212   : > { %4140 = vmatprep.subr.bf16.mxu1 %v4646_v1 }
 0x213   : > { %4120 = vmatprep.subr.bf16.mxu0 %v4119_v34 }
 0x214   : > { %4122 = vmatpush3.bf16.msra.mxu0 %v4119_v34  ;;  %3903 = vmatmul.mubr.msk.f32.gmra.mrb[26].mxu1 %vm602_vm1, %v3864_v15  ;;  %v2488_v15 = vld [vmem:[%s4998_s10 + $0xf8] sm:$0xff] }
 0x215   : > { %4146 = vmatpush3.bf16.msra.mxu1 %v4646_v1  ;;  %3953 = vmatprep.mubr.msk.f32.mxu1 %vm2493_vm10, %v2473_v58  ;;  %v2450_v1 = vld [vmem:[%s4997_s9 + $0x8] sm:$0xff] }
 0x216   : > { %4141 = vmatprep.subr.bf16.mxu1 %v4115_v26 }
 0x219   : > { %4147 = vmatpush3.bf16.msra.mxu1 %v4115_v26 }
 0x21a   : > { %4142 = vmatprep.subr.bf16.mxu1 %v4119_v34 }
 0x21d   : > { %4148 = vmatpush3.bf16.msra.mxu1 %v4119_v34 }
 0x2e3   : > { %v3901_v37 = vpop.f32.mrb[24].mxu1 }
 0x2e4   : > { %v2454_v38 = vadd.f32 %v3901_v37, %v2450_v1  ;;  %v2426_v39 = vpop.f32.mrb[25].mxu1 }
 0x2e5   : > { %v2453_v40 = vadd.f32 %v2449_v36, %v2426_v39 }
 0x2e7   : > { %v4123_v43 = vpack.c.bf16 %v2454_v38, %v2453_v40  ;;  %v3904_v44 = vpop.f32.mrb[26].mxu1 }
 0x2e8   : > { %v2456_v45 = vadd.f32 %v3904_v44, %v2452_v41  ;;  %v2436_v47 = vpop.f32.mrb[27].mxu1 }
 0x2e9   : > { %v2455_v48 = vadd.f32 %v2451_v42, %v2436_v47  ;;  %4124 = vmatprep.subr.bf16.mxu0 %v4123_v43  ;;  %4143 = vmatprep.subr.bf16.mxu1 %v4123_v43 }
 0x2ea   : > { %4126 = vmatpush3.bf16.msra.mxu0 %v4123_v43  ;;  %4149 = vmatpush3.bf16.msra.mxu1 %v4123_v43 }
 0x2eb   : > { %v4127_v50 = vpack.c.bf16 %v2456_v45, %v2455_v48 }
 0x2ed   : > { %4128 = vmatprep.subr.bf16.mxu0 %v4127_v50  ;;  %4144 = vmatprep.subr.bf16.mxu1 %v4127_v50 }
 0x2ee   : > { %4130 = vmatpush3.bf16.msra.mxu0 %v4127_v50  ;;  %4150 = vmatpush3.bf16.msra.mxu1 %v4127_v50 }
 0x2ef   : > { %4132 = vmatprep.subr.bf16.mxu0 %v4341_v16 }
 0x2f1   : > { %3930 = vmatmul.mubr.msk.f32.vlgmr.msra.gmra.mrb[36].mxu0 %vm2493_vm10, %v2458_v51  ;;  %3954 = vmatmul.mubr.msk.f32.vlgmr.msra.gmra.mrb[28].mxu1 %vm2493_vm10, %v2474_v52 }
 0x2f2   : > { %3932 = vmatprep.mubr.msk.f32.mxu0 %vm2493_vm10, %v2459_v53  ;;  %3956 = vmatprep.mubr.msk.f32.mxu1 %vm2493_vm10, %v2475_v54  ;;  %v3182_v53 = vld [vmem:[%s4999_s11 + $0x8] sm:$0xff]  ;;  %v3181_v54 = vld [vmem:[%s4999_s11] sm:$0xff] }
 0x2f3   : > { %4134 = vmatpush3.bf16.msra.mxu0 %v4341_v16  ;;  %v2463_v16 = vld [vmem:[%s4998_s10 + $0x30] sm:$0xff] }
 0x2f4   : > { %4136 = vmatprep.subr.bf16.mxu0 %v4468_v49 }
 0x2f5   : > { %3933 = vmatmul.mubr.msk.f32.gmra.mrb[38].mxu0 %vm2493_vm10, %v2460_v55  ;;  %3957 = vmatmul.mubr.msk.f32.gmra.mrb[30].mxu1 %vm2493_vm10, %v2476_v56 }
 0x2f6   : > { %3935 = vmatprep.mubr.msk.f32.mxu0 %vm2493_vm10, %v2461_v57  ;;  %3959 = vmatprep.mubr.msk.f32.mxu1 %vm2493_vm10, %v2477_v46 }
 0x2f9   : > { %3936 = vmatmul.mubr.msk.f32.gmra.mrb[40].mxu0 %vm2493_vm10, %v2462_v59  ;;  %3960 = vmatmul.mubr.msk.f32.gmra.mrb[32].mxu1 %vm2493_vm10, %v2478_v60  ;;  %v3184_v59 = vld [vmem:[%s4999_s11 + $0x18] sm:$0xff]  ;;  %v3183_v60 = vld [vmem:[%s4999_s11 + $0x10] sm:$0xff] }
 0x2fa   : > { %3938 = vmatprep.mubr.msk.f32.mxu0 %vm2493_vm10, %v2463_v16  ;;  %3962 = vmatprep.mubr.msk.f32.mxu1 %vm2493_vm10, %v2479_v61 }
 0x2fd   : > { %3939 = vmatmul.mubr.msk.f32.gmra.mrb[42].mxu0 %vm2493_vm10, %v2464_v62  ;;  %3963 = vmatmul.mubr.msk.f32.gmra.mrb[34].mxu1 %vm2493_vm10, %v2480_v63 }
 0x2fe   : > { %3941 = vmatprep.mubr.msk.f32.mxu0 %vm2493_vm10, %v2465_v0  ;;  %3965 = vmatprep.mubr.msk.f32.mxu1 %vm2493_vm10, %v2481_v2  ;;  %v3186_v2 = vld [vmem:[%s4999_s11 + $0x28] sm:$0xff] }
 0x301   : > { %3942 = vmatmul.mubr.msk.f32.gmra.mrb[44].mxu0 %vm2493_vm10, %v2466_v3  ;;  %3966 = vmatmul.mubr.msk.f32.gmra.mrb[36].mxu1 %vm2493_vm10, %v2482_v4 }
 0x302   : > { %3944 = vmatprep.mubr.msk.f32.mxu0 %vm2493_vm10, %v2467_v5  ;;  %3968 = vmatprep.mubr.msk.f32.mxu1 %vm2493_vm10, %v2483_v6  ;;  %v3185_v5 = vld [vmem:[%s4999_s11 + $0x20] sm:$0xff] }
 0x305   : > { %3945 = vmatmul.mubr.msk.f32.gmra.mrb[46].mxu0 %vm2493_vm10, %v2468_v7  ;;  %3969 = vmatmul.mubr.msk.f32.gmra.mrb[38].mxu1 %vm2493_vm10, %v2484_v8 }
 0x306   : > { %3971 = vmatprep.mubr.msk.f32.mxu1 %vm2493_vm10, %v2485_v9  ;;  %3947 = vmatprep.mubr.msk.f32.mxu0 %vm2493_vm10, %v2469_v10  ;;  %v3188_v10 = vld [vmem:[%s4999_s11 + $0x38] sm:$0xff] }
 0x309   : > { %3972 = vmatmul.mubr.msk.f32.gmra.mrb[40].mxu1 %vm2493_vm10, %v2486_v11  ;;  %3948 = vmatmul.mubr.msk.f32.gmra.mrb[48].mxu0 %vm2493_vm10, %v2470_v12 }
 0x30a   : > { %3974 = vmatprep.mubr.msk.f32.mxu1 %vm2493_vm10, %v2487_v13  ;;  %3950 = vmatprep.mubr.msk.f32.mxu0 %vm2493_vm10, %v2471_v14  ;;  %v3187_v13 = vld [vmem:[%s4999_s11 + $0x30] sm:$0xff] }
 0x30d   : > { %3975 = vmatmul.mubr.msk.f32.gmra.mrb[42].mxu1 %vm2493_vm10, %v2488_v15  ;;  %3951 = vmatmul.mubr.msk.f32.gmra.mrb[50].mxu0 %vm2493_vm10, %v2472_v17 }
 0x30e   : > { %3977 = vmatprep.mubr.msk.f32.mxu1 %vm2493_vm10, %v2489_v18 }
 0x311   : > { %3978 = vmatmul.mubr.msk.f32.gmra.mrb[44].mxu1 %vm2493_vm10, %v2490_v19  ;;  %v3190_v19 = vld [vmem:[%s4999_s11 + $0x48] sm:$0xff] }
 0x312   : > { %3980 = vmatprep.mubr.msk.f32.mxu1 %vm2493_vm10, %v2491_v20 }
 0x315   : > { %3981 = vmatmul.mubr.msk.f32.gmra.mrb[46].mxu1 %vm2493_vm10, %v2492_v21 }
 0x3c4   : > { %v3931_v22 = vpop.f32.mrb[36].mxu0  ;;  %v4869_v23 = vpop.f32.mrb[28].mxu1 }
 0x3c5   : > { %v2668_v24 = vpop.f32.mrb[37].mxu0  ;;  %v4871_v25 = vpop.f32.mrb[29].mxu1 }
 0x3c6   : > { %3987 = vmatprep.mubr.msk.f32.mxu0 %vm602_vm1, %v2668_v24 }
 0x3c7   : > { %3988 = vmatmul.mubr.msk.f32.vlgmr.msra.gmra.mrb[48].mxu0 %vm602_vm1, %v3931_v22  ;;  %v3189_v22 = vld [vmem:[%s4999_s11 + $0x40] sm:$0xff] }
 0x3c8   : > { %v3934_v26 = vpop.f32.mrb[38].mxu0  ;;  %4138 = vmatpush3.bf16.msra.mxu0 %v4468_v49  ;;  %v4876_v27 = vpop.f32.mrb[30].mxu1 }
 0x3c9   : > { %v2678_v28 = vpop.f32.mrb[39].mxu0  ;;  %v4878_v29 = vpop.f32.mrb[31].mxu1 }
 0x3ca   : > { %3990 = vmatprep.mubr.msk.f32.mxu0 %vm602_vm1, %v2678_v28 }
 0x3cb   : > { %3991 = vmatmul.mubr.msk.f32.gmra.mrb[50].mxu0 %vm602_vm1, %v3934_v26 }
 0x3cc   : > { %v3937_v30 = vpop.f32.mrb[40].mxu0  ;;  %v4882_v31 = vpop.f32.mrb[32].mxu1 }
 0x3cd   : > { %v2688_v32 = vpop.f32.mrb[41].mxu0  ;;  %v4884_v33 = vpop.f32.mrb[33].mxu1 }
 0x3ce   : > { %3993 = vmatprep.mubr.msk.f32.mxu0 %vm602_vm1, %v2688_v32 }
 0x3cf   : > { %3994 = vmatmul.mubr.msk.f32.gmra.mrb[52].mxu0 %vm602_vm1, %v3937_v30  ;;  %v3191_v30 = vld [vmem:[%s4999_s11 + $0x50] sm:$0xff] }
 0x3d0   : > { %v3940_v49 = vpop.f32.mrb[42].mxu0  ;;  %v4888_v34 = vpop.f32.mrb[34].mxu1 }
 0x3d1   : > { %v2698_v35 = vpop.f32.mrb[43].mxu0  ;;  %v4890_v58 = vpop.f32.mrb[35].mxu1 }
 0x3d2   : > { %3996 = vmatprep.mubr.msk.f32.mxu0 %vm602_vm1, %v2698_v35 }
 0x3d3   : > { %3997 = vmatmul.mubr.msk.f32.gmra.mrb[54].mxu0 %vm602_vm1, %v3940_v49 }
 0x3d4   : > { %v3943_v1 = vpop.f32.mrb[44].mxu0  ;;  %v3967_v36 = vpop.f32.mrb[36].mxu1 }
 0x3d5   : > { %v2708_v37 = vpop.f32.mrb[45].mxu0  ;;  %v2788_v38 = vpop.f32.mrb[37].mxu1 }
 0x3d6   : > { %3999 = vmatprep.mubr.msk.f32.mxu0 %vm602_vm1, %v2708_v37 }
 0x3d7   : > { %4000 = vmatmul.mubr.msk.f32.gmra.mrb[56].mxu0 %vm602_vm1, %v3943_v1 }
 0x3d8   : > { %v3946_v39 = vpop.f32.mrb[46].mxu0  ;;  %v3970_v40 = vpop.f32.mrb[38].mxu1 }
 0x3d9   : > { %v2718_v41 = vpop.f32.mrb[47].mxu0  ;;  %v2798_v42 = vpop.f32.mrb[39].mxu1 }
 0x3da   : > { %4002 = vmatprep.mubr.msk.f32.mxu0 %vm602_vm1, %v2718_v41 }
 0x3db   : > { %4003 = vmatmul.mubr.msk.f32.gmra.mrb[58].mxu0 %vm602_vm1, %v3946_v39 }
 0x3dc   : > { %4009 = vmatprep.mubr.msk.f32.mxu0 %vm602_vm1, %v2788_v38  ;;  %v3973_v43 = vpop.f32.mrb[40].mxu1 }
 0x3dd   : > { %v2808_v44 = vpop.f32.mrb[41].mxu1 }
 0x3df   : > { %4010 = vmatmul.mubr.msk.f32.vlgmr.msra.gmra.mrb[48].mxu0 %vm602_vm1, %v3967_v36 }
 0x3e0   : > { %4012 = vmatprep.mubr.msk.f32.mxu0 %vm602_vm1, %v2798_v42  ;;  %v3976_v45 = vpop.f32.mrb[42].mxu1 }
 0x3e1   : > { %v2818_v47 = vpop.f32.mrb[43].mxu1 }
 0x3e3   : > { %4013 = vmatmul.mubr.msk.f32.gmra.mrb[50].mxu0 %vm602_vm1, %v3970_v40 }
 0x3e4   : > { %4015 = vmatprep.mubr.msk.f32.mxu0 %vm602_vm1, %v2808_v44  ;;  %v3979_v48 = vpop.f32.mrb[44].mxu1 }
 0x3e5   : > { %v2828_v50 = vpop.f32.mrb[45].mxu1 }
 0x3e7   : > { %4016 = vmatmul.mubr.msk.f32.gmra.mrb[52].mxu0 %vm602_vm1, %v3973_v43 }
 0x3e8   : > { %4018 = vmatprep.mubr.msk.f32.mxu0 %vm602_vm1, %v2818_v47  ;;  %v3982_v51 = vpop.f32.mrb[46].mxu1 }
 0x3e9   : > { %v2838_v52 = vpop.f32.mrb[47].mxu1 }
 0x3eb   : > { %4019 = vmatmul.mubr.msk.f32.gmra.mrb[54].mxu0 %vm602_vm1, %v3976_v45 }
 0x3ec   : > { %4021 = vmatprep.mubr.msk.f32.mxu0 %vm602_vm1, %v2828_v50 }
 0x3ef   : > { %4022 = vmatmul.mubr.msk.f32.gmra.mrb[56].mxu0 %vm602_vm1, %v3979_v48 }
 0x3f0   : > { %4024 = vmatprep.mubr.msk.f32.mxu0 %vm602_vm1, %v2838_v52 }
 0x3f3   : > { %4025 = vmatmul.mubr.msk.f32.gmra.mrb[58].mxu0 %vm602_vm1, %v3982_v51 }
 0x4b2   : > { %v4011_v55 = vpop.f32.mrb[48].mxu0 }
 0x4b3   : > { %v3194_v56 = vadd.f32 %v4011_v55, %v3182_v53  ;;  %v3110_v57 = vpop.f32.mrb[49].mxu0 }
 0x4b4   : > { %v3193_v46 = vadd.f32 %v3181_v54, %v3110_v57 }
 0x4b5   : > { %3206 = vst.msk [vmem:[%s4921_s29 + $0x8] sm:$0xff] %vm602_vm1, %v3194_v56 }
 0x4b6   : > { %3205 = vst.msk [vmem:[%s4921_s29] sm:$0xff] %vm602_vm1, %v3193_v46  ;;  %v4014_v16 = vpop.f32.mrb[50].mxu0 }
 0x4b7   : > { %v3196_v61 = vadd.f32 %v4014_v16, %v3184_v59  ;;  %v3120_v62 = vpop.f32.mrb[51].mxu0 }
 0x4b8   : > { %v3195_v63 = vadd.f32 %v3183_v60, %v3120_v62 }
 0x4b9   : > { %3208 = vst.msk [vmem:[%s4921_s29 + $0x18] sm:$0xff] %vm602_vm1, %v3196_v61 }
 0x4ba   : > { %3207 = vst.msk [vmem:[%s4921_s29 + $0x10] sm:$0xff] %vm602_vm1, %v3195_v63  ;;  %v4017_v0 = vpop.f32.mrb[52].mxu0 }
 0x4bb   : > { %v4151_v3 = vadd.f32 %v4017_v0, %v4869_v23  ;;  %v3130_v4 = vpop.f32.mrb[53].mxu0 }
 0x4bc   : > { %v4152_v6 = vadd.f32 %v3130_v4, %v4871_v25 }
 0x4bd   : > { %v3198_v7 = vadd.f32 %v4151_v3, %v3186_v2 }
 0x4be   : > { %v3197_v8 = vadd.f32 %v4152_v6, %v3185_v5  ;;  %v4020_v9 = vpop.f32.mrb[54].mxu0 }
 0x4bf   : > { %3210 = vst.msk [vmem:[%s4921_s29 + $0x28] sm:$0xff] %vm602_vm1, %v3198_v7  ;;  %v4153_v11 = vadd.f32 %v4020_v9, %v4876_v27  ;;  %v3140_v12 = vpop.f32.mrb[55].mxu0  ;;  %v3192_v27 = vld [vmem:[%s4999_s11 + $0x58] sm:$0xff] }
 0x4c0   : > { %3209 = vst.msk [vmem:[%s4921_s29 + $0x20] sm:$0xff] %vm602_vm1, %v3197_v8  ;;  %v4154_v14 = vadd.f32 %v3140_v12, %v4878_v29 }
 0x4c1   : > { %v3200_v15 = vadd.f32 %v4153_v11, %v3188_v10 }
 0x4c2   : > { %v3199_v17 = vadd.f32 %v4154_v14, %v3187_v13  ;;  %v4023_v18 = vpop.f32.mrb[56].mxu0 }
 0x4c3   : > { %3212 = vst.msk [vmem:[%s4921_s29 + $0x38] sm:$0xff] %vm602_vm1, %v3200_v15  ;;  %v4155_v20 = vadd.f32 %v4023_v18, %v4882_v31  ;;  %v3150_v21 = vpop.f32.mrb[57].mxu0 }
 0x4c4   : > { %3211 = vst.msk [vmem:[%s4921_s29 + $0x30] sm:$0xff] %vm602_vm1, %v3199_v17  ;;  %v4156_v23 = vadd.f32 %v3150_v21, %v4884_v33 }
 0x4c5   : > { %v3202_v24 = vadd.f32 %v4155_v20, %v3190_v19 }
 0x4c6   : > { %v3201_v25 = vadd.f32 %v4156_v23, %v3189_v22  ;;  %v4026_v26 = vpop.f32.mrb[58].mxu0 }
 0x4c7   : > { %3214 = vst.msk [vmem:[%s4921_s29 + $0x48] sm:$0xff] %vm602_vm1, %v3202_v24  ;;  %v4157_v28 = vadd.f32 %v4026_v26, %v4888_v34  ;;  %v3160_v29 = vpop.f32.mrb[59].mxu0 }
 0x4c8   : > { %3213 = vst.msk [vmem:[%s4921_s29 + $0x40] sm:$0xff] %vm602_vm1, %v3201_v25  ;;  %v4158_v31 = vadd.f32 %v3160_v29, %v4890_v58 }
 0x4c9   : > { %v3204_v32 = vadd.f32 %v4157_v28, %v3192_v27 }
 0x4ca   : > { %v3203_v33 = vadd.f32 %v4158_v31, %v3191_v30 }
 0x4cb   : > { %3216 = vst.msk [vmem:[%s4921_s29 + $0x58] sm:$0xff] %vm602_vm1, %v3204_v32 }
 0x4cc   : > { %3215 = vst.msk [vmem:[%s4921_s29 + $0x50] sm:$0xff] %vm602_vm1, %v3203_v33 }
 0x4cd PF: > { %s22_s21 = sadd.s32 1, %s4234_s21  }
 0x4ce   : > { %p19_p4 = scmp.ge.s32.totalorder %s22_s21, 4  }
 0x4d0   :  { %21 = sbr.rel (!%p19_p4) target bundleno = 1 (0x1), region = 106 }

</bundles_post_ra>
